<compile_context>
chip_gen: v7x
topology: tpu7x:2x2x1
jax: 0.10.0
libtpu: 0.0.40
codegen_flags: <defaults>
</compile_context>

<pallas_src>
import math

import jax
import jax.numpy as jnp
from jax.experimental import pallas as pl
from jax.experimental.pallas import tpu as pltpu


def _round_up(x, m):
    return (x + m - 1) // m * m


# --------------------------------------------------------------------------- #
# Kernel
# --------------------------------------------------------------------------- #
def wae_forward_kernel(x_ref, w1_ref, wmid_ref, w8_ref, bmid_ref, b8_ref,
                       xr_ref, z_ref):
    """One batch tile of the full 8-layer WAE MLP (encoder + decoder)."""

    def dense(h, w, b_row):
        # bf16 operands on the MXU, f32 accumulation, f32 bias add.
        return jnp.dot(h.astype(jnp.bfloat16), w,
                       preferred_element_type=jnp.float32) + b_row

    x = x_ref[...]                                                  # (TB, D_pad) f32

    # --- encoder ---
    h = jnp.maximum(dense(x, w1_ref[...], bmid_ref[0:1, :]), 0.0)   # fc1 + relu
    h = jnp.maximum(dense(h, wmid_ref[0], bmid_ref[1:2, :]), 0.0)   # fc2 + relu
    h = jnp.maximum(dense(h, wmid_ref[1], bmid_ref[2:3, :]), 0.0)   # fc3 + relu
    z = dense(h, wmid_ref[2], bmid_ref[3:4, :])                     # fc4 (latent)
    z_ref[...] = z.astype(z_ref.dtype)                              # lane-dense (TB, 128) bf16

    # --- decoder ---
    d = jnp.maximum(dense(z, wmid_ref[3], bmid_ref[4:5, :]), 0.0)   # fc5 + relu
    d = jnp.maximum(dense(d, wmid_ref[4], bmid_ref[5:6, :]), 0.0)   # fc6 + relu
    d = jnp.maximum(dense(d, wmid_ref[5], bmid_ref[6:7, :]), 0.0)   # fc7 + relu
    logits = dense(d, w8_ref[...], b8_ref[...])                     # fc8
    # sigmoid(x) == 0.5*(tanh(x/2)+1): single EUP op, exact sigmoid numerics.
    xr_ref[...] = (0.5 * (jnp.tanh(0.5 * logits) + 1.0)).astype(xr_ref.dtype)


# --------------------------------------------------------------------------- #
# Parameter construction / packing
# --------------------------------------------------------------------------- #
def init_linear(key, in_f, out_f):
    # Mimics torch.nn.Linear default init: U(-1/sqrt(in), 1/sqrt(in)).
    kw, kb = jax.random.split(key)
    bound = 1.0 / math.sqrt(in_f)
    w = jax.random.uniform(kw, (in_f, out_f), jnp.float32, -bound, bound)  # (in, out)
    b = jax.random.uniform(kb, (out_f,), jnp.float32, -bound, bound)
    return w, b


def make_wae_params(key, input_dim, dim_z):
    h1, h2, h3 = 128, 50, 12  # hardcoded in the PyTorch module
    dims = [
        (input_dim, h1), (h1, h2), (h2, h3), (h3, dim_z),   # fc1..fc4
        (dim_z, h3), (h3, h2), (h2, h1), (h1, input_dim),   # fc5..fc8
    ]
    keys = jax.random.split(key, len(dims))
    params = []
    for k, (i, o) in zip(keys, dims):
        params.extend(init_linear(k, i, o))
    return params  # [w1, b1, ..., w8, b8]  (f32, weights stored as (in, out))


def pack_wae_params(params, input_dim, dim_z):
    """Zero-pad hidden/latent dims to 128 lanes, cast weights to bf16 and pack
    the six small square weights / seven small biases into single tensors."""
    ws = params[0::2]
    bs = params[1::2]
    P = _round_up(max(128, 50, 12, dim_z), 128)     # padded hidden/latent width
    D_pad = _round_up(input_dim, 128)

    def pad_w(w, rows, cols):
        out = jnp.zeros((rows, cols), jnp.float32)
        return out.at[:w.shape[0], :w.shape[1]].set(w)

    def pad_b(b, cols):
        out = jnp.zeros((cols,), jnp.float32)
        return out.at[:b.shape[0]].set(b)

    w1 = pad_w(ws[0], D_pad, P).astype(jnp.bfloat16)                          # (D_pad, P)
    wmid = jnp.stack([pad_w(w, P, P) for w in ws[1:7]]).astype(jnp.bfloat16)  # (6, P, P)
    w8 = pad_w(ws[7], P, D_pad).astype(jnp.bfloat16)                          # (P, D_pad)
    bmid = jnp.stack([pad_b(b, P) for b in bs[0:7]])                          # (7, P) f32
    b8 = pad_b(bs[7], D_pad).reshape(1, D_pad)                                # (1, D_pad) f32
    return w1, wmid, w8, bmid, b8


# --------------------------------------------------------------------------- #
# Tiling / VMEM-limit selection (generation dependent)
# --------------------------------------------------------------------------- #
def _select_tiling(tb_max, vmem_limit_bytes):
    if tb_max is not None and vmem_limit_bytes is not None:
        return tb_max, vmem_limit_bytes
    try:
        vmem_cap = pltpu.get_tpu_info().vmem_capacity_bytes
    except Exception:
        vmem_cap = 128 * 1024 * 1024
    if vmem_cap <= 64 * 1024 * 1024:
        # v7x-class: 64 MiB VMEM per TensorCore -> keep headroom.
        return (tb_max or 1024), (vmem_limit_bytes or 44 * 1024 * 1024)
    # v5e / v6e: 128 MiB VMEM -> bigger streaming tiles.
    return (tb_max or 2048), (vmem_limit_bytes or 96 * 1024 * 1024)


# --------------------------------------------------------------------------- #
# Wrapper
# --------------------------------------------------------------------------- #
def wae_forward(x_nchw, packed_params, dim_z, *, tb_max=None, vmem_limit_bytes=None):
    w1, wmid, w8, bmid, b8 = packed_params
    B = x_nchw.shape[0]
    D = int(math.prod(x_nchw.shape[1:]))
    D_pad = w1.shape[0]
    P = bmid.shape[1]

    tb_max, vmem_limit_bytes = _select_tiling(tb_max, vmem_limit_bytes)

    # Flatten NCHW row-major (same as torch x.view(-1, x[0].numel())); keep f32 —
    # the kernel casts to bf16 internally, avoiding a standalone HBM cast pass.
    x_flat = x_nchw.reshape(B, D)

    # Batch tiling: TB rows per grid step, multiple of 16 (bf16 output packing),
    # sized so the grid has >= 2 steps when possible (v7x megacore gets both TCs).
    TB = min(tb_max, _round_up((B + 1) // 2, 16))
    B_pad = _round_up(B, TB)
    if (B_pad != B) or (D_pad != D):
        x_flat = jnp.pad(x_flat, ((0, B_pad - B), (0, D_pad - D)))
    grid = (B_pad // TB,)

    cost = pl.CostEstimate(
        flops=int(2 * B_pad * (2 * D_pad * P + 6 * P * P)),
        transcendentals=int(B_pad * D_pad),
        bytes_accessed=int(4 * B_pad * D_pad        # x (f32 in)
                           + 2 * B_pad * D_pad      # x_r (bf16 out)
                           + 2 * B_pad * P          # z (bf16 out, lane-padded)
                           + 2 * (w1.size + wmid.size + w8.size)
                           + 4 * (bmid.size + b8.size)),
    )

    xr_pad, z_pad = pl.pallas_call(
        wae_forward_kernel,
        out_shape=(
            jax.ShapeDtypeStruct((B_pad, D_pad), jnp.bfloat16),   # x_r
            jax.ShapeDtypeStruct((B_pad, P), jnp.bfloat16),       # z (lane-padded)
        ),
        grid=grid,
        in_specs=[
            pl.BlockSpec((TB, D_pad), lambda i: (i, 0)),          # x: batch-tiled
            pl.BlockSpec(w1.shape, lambda i: (0, 0)),             # weights: full arrays,
            pl.BlockSpec(wmid.shape, lambda i: (0, 0, 0)),        # constant block index
            pl.BlockSpec(w8.shape, lambda i: (0, 0)),             # -> fetched once
            pl.BlockSpec(bmid.shape, lambda i: (0, 0)),
            pl.BlockSpec(b8.shape, lambda i: (0, 0)),
        ],
        out_specs=(
            pl.BlockSpec((TB, D_pad), lambda i: (i, 0)),
            pl.BlockSpec((TB, P), lambda i: (i, 0)),
        ),
        compiler_params=pltpu.CompilerParams(
            dimension_semantics=("parallel",),
            vmem_limit_bytes=vmem_limit_bytes,
        ),
        cost_estimate=cost,
    )(x_flat, w1, wmid, w8, bmid, b8)

    # Outputs are bf16 (HBM-traffic optimization); callers needing f32 can upcast.
    return xr_pad[:B, :D], z_pad[:B, :dim_z]


# --------------------------------------------------------------------------- #
# Pure-JAX reference (mirrors the kernel's bf16 weight/activation casts)
# --------------------------------------------------------------------------- #
def wae_forward_ref(x_nchw, params, dim_z):
    B = x_nchw.shape[0]
    D = int(math.prod(x_nchw.shape[1:]))
    ws = [w.astype(jnp.bfloat16).astype(jnp.float32) for w in params[0::2]]
    bs = [b.astype(jnp.float32) for b in params[1::2]]

    def cast(h):
        return h.astype(jnp.bfloat16).astype(jnp.float32)

    h = cast(x_nchw.reshape(B, D))
    for i in range(3):                                   # fc1..fc3 + relu
        h = jnp.maximum(cast(h) @ ws[i] + bs[i], 0.0)
    z = cast(h) @ ws[3] + bs[3]                          # fc4
    d = z
    for i in range(4, 7):                                # fc5..fc7 + relu
        d = jnp.maximum(cast(d) @ ws[i] + bs[i], 0.0)
    logits = cast(d) @ ws[7] + bs[7]                     # fc8
    x_r = 1.0 / (1.0 + jnp.exp(-logits))
    return x_r, z


# --------------------------------------------------------------------------- #
# Smoke test
# --------------------------------------------------------------------------- #
if __name__ == "__main__":
    key = jax.random.PRNGKey(0)
    k_x, k_p = jax.random.split(key)

    B, C, H, W = 2, 4, 16, 16
    input_dim = C * H * W      # 1024
    dim_z = 8

    x = jax.random.uniform(k_x, (B, C, H, W), jnp.float32)  # image-like input in [0,1)
    params = make_wae_params(k_p, input_dim, dim_z)
    packed = pack_wae_params(params, input_dim, dim_z)

    x_r, z = wae_forward(x, packed, dim_z)
    jax.block_until_ready((x_r, z))

    # Sanity check against pure-JAX reference (kernel outputs are bf16).
    x_r_ref, z_ref_val = wae_forward_ref(x, params, dim_z)
    assert x_r.shape == (B, input_dim) and z.shape == (B, dim_z)
    assert jnp.allclose(z.astype(jnp.float32), z_ref_val, atol=1e-2, rtol=1e-2)
    assert jnp.allclose(x_r.astype(jnp.float32), x_r_ref, atol=1e-2, rtol=1e-2)

    # TODO(synk): loss_fn / sample_prior / MMD kernel are training-time ops outside
    # the module's forward() and are not implemented here.
    print("KERNEL_OK")
</pallas_src>

<mosaic_0001>
module attributes {stable_mosaic.version = 11 : i64} {
  func.func @wae_forward_kernel(%arg0: i32, %arg1: memref<16x1024xf32, #tpu.memory_space<vmem>>, %arg2: memref<1024x128xbf16, #tpu.memory_space<vmem>>, %arg3: memref<6x128x128xbf16, #tpu.memory_space<vmem>>, %arg4: memref<128x1024xbf16, #tpu.memory_space<vmem>>, %arg5: memref<7x128xf32, #tpu.memory_space<vmem>>, %arg6: memref<1x1024xf32, #tpu.memory_space<vmem>>, %arg7: memref<16x1024xbf16, #tpu.memory_space<vmem>>, %arg8: memref<16x128xbf16, #tpu.memory_space<vmem>>) attributes {dimension_semantics = [#tpu.dimension_semantics<parallel>], iteration_bounds = array<i64: 1>, scalar_prefetch = 0 : i64, scratch_operands = 0 : i64, tpu.core_type = #tpu.core_type<tc>, window_params = [{transform_indices = @transform_0, window_bounds = array<i64: 16, 1024>}, {pipeline_mode = #tpu.pipeline_mode<synchronous>, transform_indices = @transform_1, window_bounds = array<i64: 1024, 128>}, {pipeline_mode = #tpu.pipeline_mode<synchronous>, transform_indices = @transform_2, window_bounds = array<i64: 6, 128, 128>}, {pipeline_mode = #tpu.pipeline_mode<synchronous>, transform_indices = @transform_3, window_bounds = array<i64: 128, 1024>}, {pipeline_mode = #tpu.pipeline_mode<synchronous>, transform_indices = @transform_4, window_bounds = array<i64: 7, 128>}, {pipeline_mode = #tpu.pipeline_mode<synchronous>, transform_indices = @transform_5, window_bounds = array<i64: 1, 1024>}, {transform_indices = @transform_6, window_bounds = array<i64: 16, 1024>}, {transform_indices = @transform_7, window_bounds = array<i64: 16, 128>}]} {
    %c0 = arith.constant 0 : index
    %c0_0 = arith.constant 0 : index
    %0 = vector.load %arg1[%c0, %c0_0] : memref<16x1024xf32, #tpu.memory_space<vmem>>, vector<16x1024xf32>
    %c0_1 = arith.constant 0 : index
    %c0_2 = arith.constant 0 : index
    %1 = vector.load %arg2[%c0_1, %c0_2] : memref<1024x128xbf16, #tpu.memory_space<vmem>>, vector<1024x128xbf16>
    %c0_3 = arith.constant 0 : index
    %c0_4 = arith.constant 0 : index
    %2 = vector.load %arg5[%c0_3, %c0_4] : memref<7x128xf32, #tpu.memory_space<vmem>>, vector<1x128xf32>
    %3 = arith.truncf %0 : vector<16x1024xf32> to vector<16x1024xbf16>
    %cst = arith.constant dense<0.000000e+00> : vector<16x128xf32>
    %4 = tpu.matmul %3, %1, %cst {dimension_numbers = #tpu.dot_dimension_numbers<[1], [0], [0], [1], [0, 0, 1, 1], [], []>} : vector<16x1024xbf16>, vector<1024x128xbf16>, vector<16x128xf32> -> vector<16x128xf32>
    %5 = vector.broadcast %2 : vector<1x128xf32> to vector<16x128xf32>
    %6 = arith.addf %4, %5 : vector<16x128xf32>
    %cst_5 = arith.constant 0.000000e+00 : f32
    %7 = vector.broadcast %cst_5 : f32 to vector<16x128xf32>
    %8 = arith.maximumf %6, %7 : vector<16x128xf32>
    %c0_6 = arith.constant 0 : index
    %c0_7 = arith.constant 0 : index
    %c0_8 = arith.constant 0 : index
    %9 = vector.load %arg3[%c0_6, %c0_7, %c0_8] : memref<6x128x128xbf16, #tpu.memory_space<vmem>>, vector<1x128x128xbf16>
    %10 = vector.shape_cast %9 : vector<1x128x128xbf16> to vector<128x128xbf16>
    %c1 = arith.constant 1 : index
    %c0_9 = arith.constant 0 : index
    %11 = vector.load %arg5[%c1, %c0_9] : memref<7x128xf32, #tpu.memory_space<vmem>>, vector<1x128xf32>
    %12 = arith.truncf %8 : vector<16x128xf32> to vector<16x128xbf16>
    %cst_10 = arith.constant dense<0.000000e+00> : vector<16x128xf32>
    %13 = tpu.matmul %12, %10, %cst_10 {dimension_numbers = #tpu.dot_dimension_numbers<[1], [0], [0], [1], [0, 0, 1, 1], [], []>} : vector<16x128xbf16>, vector<128x128xbf16>, vector<16x128xf32> -> vector<16x128xf32>
    %14 = vector.broadcast %11 : vector<1x128xf32> to vector<16x128xf32>
    %15 = arith.addf %13, %14 : vector<16x128xf32>
    %cst_11 = arith.constant 0.000000e+00 : f32
    %16 = vector.broadcast %cst_11 : f32 to vector<16x128xf32>
    %17 = arith.maximumf %15, %16 : vector<16x128xf32>
    %c1_12 = arith.constant 1 : index
    %c0_13 = arith.constant 0 : index
    %c0_14 = arith.constant 0 : index
    %18 = vector.load %arg3[%c1_12, %c0_13, %c0_14] : memref<6x128x128xbf16, #tpu.memory_space<vmem>>, vector<1x128x128xbf16>
    %19 = vector.shape_cast %18 : vector<1x128x128xbf16> to vector<128x128xbf16>
    %c2 = arith.constant 2 : index
    %c0_15 = arith.constant 0 : index
    %20 = vector.load %arg5[%c2, %c0_15] : memref<7x128xf32, #tpu.memory_space<vmem>>, vector<1x128xf32>
    %21 = arith.truncf %17 : vector<16x128xf32> to vector<16x128xbf16>
    %cst_16 = arith.constant dense<0.000000e+00> : vector<16x128xf32>
    %22 = tpu.matmul %21, %19, %cst_16 {dimension_numbers = #tpu.dot_dimension_numbers<[1], [0], [0], [1], [0, 0, 1, 1], [], []>} : vector<16x128xbf16>, vector<128x128xbf16>, vector<16x128xf32> -> vector<16x128xf32>
    %23 = vector.broadcast %20 : vector<1x128xf32> to vector<16x128xf32>
    %24 = arith.addf %22, %23 : vector<16x128xf32>
    %cst_17 = arith.constant 0.000000e+00 : f32
    %25 = vector.broadcast %cst_17 : f32 to vector<16x128xf32>
    %26 = arith.maximumf %24, %25 : vector<16x128xf32>
    %c2_18 = arith.constant 2 : index
    %c0_19 = arith.constant 0 : index
    %c0_20 = arith.constant 0 : index
    %27 = vector.load %arg3[%c2_18, %c0_19, %c0_20] : memref<6x128x128xbf16, #tpu.memory_space<vmem>>, vector<1x128x128xbf16>
    %28 = vector.shape_cast %27 : vector<1x128x128xbf16> to vector<128x128xbf16>
    %c3 = arith.constant 3 : index
    %c0_21 = arith.constant 0 : index
    %29 = vector.load %arg5[%c3, %c0_21] : memref<7x128xf32, #tpu.memory_space<vmem>>, vector<1x128xf32>
    %30 = arith.truncf %26 : vector<16x128xf32> to vector<16x128xbf16>
    %cst_22 = arith.constant dense<0.000000e+00> : vector<16x128xf32>
    %31 = tpu.matmul %30, %28, %cst_22 {dimension_numbers = #tpu.dot_dimension_numbers<[1], [0], [0], [1], [0, 0, 1, 1], [], []>} : vector<16x128xbf16>, vector<128x128xbf16>, vector<16x128xf32> -> vector<16x128xf32>
    %32 = vector.broadcast %29 : vector<1x128xf32> to vector<16x128xf32>
    %33 = arith.addf %31, %32 : vector<16x128xf32>
    %34 = arith.truncf %33 : vector<16x128xf32> to vector<16x128xbf16>
    %c0_23 = arith.constant 0 : index
    %c0_24 = arith.constant 0 : index
    %35 = vector.load %arg8[%c0_23, %c0_24] : memref<16x128xbf16, #tpu.memory_space<vmem>>, vector<16x128xbf16>
    tpu.vector_store %arg8[%c0_23, %c0_24], %34 {strides = array<i32>} : memref<16x128xbf16, #tpu.memory_space<vmem>>, vector<16x128xbf16>,
    %c3_25 = arith.constant 3 : index
    %c0_26 = arith.constant 0 : index
    %c0_27 = arith.constant 0 : index
    %36 = vector.load %arg3[%c3_25, %c0_26, %c0_27] : memref<6x128x128xbf16, #tpu.memory_space<vmem>>, vector<1x128x128xbf16>
    %37 = vector.shape_cast %36 : vector<1x128x128xbf16> to vector<128x128xbf16>
    %c4 = arith.constant 4 : index
    %c0_28 = arith.constant 0 : index
    %38 = vector.load %arg5[%c4, %c0_28] : memref<7x128xf32, #tpu.memory_space<vmem>>, vector<1x128xf32>
    %39 = arith.truncf %33 : vector<16x128xf32> to vector<16x128xbf16>
    %cst_29 = arith.constant dense<0.000000e+00> : vector<16x128xf32>
    %40 = tpu.matmul %39, %37, %cst_29 {dimension_numbers = #tpu.dot_dimension_numbers<[1], [0], [0], [1], [0, 0, 1, 1], [], []>} : vector<16x128xbf16>, vector<128x128xbf16>, vector<16x128xf32> -> vector<16x128xf32>
    %41 = vector.broadcast %38 : vector<1x128xf32> to vector<16x128xf32>
    %42 = arith.addf %40, %41 : vector<16x128xf32>
    %cst_30 = arith.constant 0.000000e+00 : f32
    %43 = vector.broadcast %cst_30 : f32 to vector<16x128xf32>
    %44 = arith.maximumf %42, %43 : vector<16x128xf32>
    %c4_31 = arith.constant 4 : index
    %c0_32 = arith.constant 0 : index
    %c0_33 = arith.constant 0 : index
    %45 = vector.load %arg3[%c4_31, %c0_32, %c0_33] : memref<6x128x128xbf16, #tpu.memory_space<vmem>>, vector<1x128x128xbf16>
    %46 = vector.shape_cast %45 : vector<1x128x128xbf16> to vector<128x128xbf16>
    %c5 = arith.constant 5 : index
    %c0_34 = arith.constant 0 : index
    %47 = vector.load %arg5[%c5, %c0_34] : memref<7x128xf32, #tpu.memory_space<vmem>>, vector<1x128xf32>
    %48 = arith.truncf %44 : vector<16x128xf32> to vector<16x128xbf16>
    %cst_35 = arith.constant dense<0.000000e+00> : vector<16x128xf32>
    %49 = tpu.matmul %48, %46, %cst_35 {dimension_numbers = #tpu.dot_dimension_numbers<[1], [0], [0], [1], [0, 0, 1, 1], [], []>} : vector<16x128xbf16>, vector<128x128xbf16>, vector<16x128xf32> -> vector<16x128xf32>
    %50 = vector.broadcast %47 : vector<1x128xf32> to vector<16x128xf32>
    %51 = arith.addf %49, %50 : vector<16x128xf32>
    %cst_36 = arith.constant 0.000000e+00 : f32
    %52 = vector.broadcast %cst_36 : f32 to vector<16x128xf32>
    %53 = arith.maximumf %51, %52 : vector<16x128xf32>
    %c5_37 = arith.constant 5 : index
    %c0_38 = arith.constant 0 : index
    %c0_39 = arith.constant 0 : index
    %54 = vector.load %arg3[%c5_37, %c0_38, %c0_39] : memref<6x128x128xbf16, #tpu.memory_space<vmem>>, vector<1x128x128xbf16>
    %55 = vector.shape_cast %54 : vector<1x128x128xbf16> to vector<128x128xbf16>
    %c6 = arith.constant 6 : index
    %c0_40 = arith.constant 0 : index
    %56 = vector.load %arg5[%c6, %c0_40] : memref<7x128xf32, #tpu.memory_space<vmem>>, vector<1x128xf32>
    %57 = arith.truncf %53 : vector<16x128xf32> to vector<16x128xbf16>
    %cst_41 = arith.constant dense<0.000000e+00> : vector<16x128xf32>
    %58 = tpu.matmul %57, %55, %cst_41 {dimension_numbers = #tpu.dot_dimension_numbers<[1], [0], [0], [1], [0, 0, 1, 1], [], []>} : vector<16x128xbf16>, vector<128x128xbf16>, vector<16x128xf32> -> vector<16x128xf32>
    %59 = vector.broadcast %56 : vector<1x128xf32> to vector<16x128xf32>
    %60 = arith.addf %58, %59 : vector<16x128xf32>
    %cst_42 = arith.constant 0.000000e+00 : f32
    %61 = vector.broadcast %cst_42 : f32 to vector<16x128xf32>
    %62 = arith.maximumf %60, %61 : vector<16x128xf32>
    %c0_43 = arith.constant 0 : index
    %c0_44 = arith.constant 0 : index
    %63 = vector.load %arg4[%c0_43, %c0_44] : memref<128x1024xbf16, #tpu.memory_space<vmem>>, vector<128x1024xbf16>
    %c0_45 = arith.constant 0 : index
    %c0_46 = arith.constant 0 : index
    %64 = vector.load %arg6[%c0_45, %c0_46] : memref<1x1024xf32, #tpu.memory_space<vmem>>, vector<1x1024xf32>
    %65 = arith.truncf %62 : vector<16x128xf32> to vector<16x128xbf16>
    %cst_47 = arith.constant dense<0.000000e+00> : vector<16x1024xf32>
    %66 = tpu.matmul %65, %63, %cst_47 {dimension_numbers = #tpu.dot_dimension_numbers<[1], [0], [0], [1], [0, 0, 1, 1], [], []>} : vector<16x128xbf16>, vector<128x1024xbf16>, vector<16x1024xf32> -> vector<16x1024xf32>
    %67 = vector.broadcast %64 : vector<1x1024xf32> to vector<16x1024xf32>
    %68 = arith.addf %66, %67 : vector<16x1024xf32>
    %cst_48 = arith.constant 5.000000e-01 : f32
    %69 = vector.broadcast %cst_48 : f32 to vector<16x1024xf32>
    %70 = arith.mulf %69, %68 : vector<16x1024xf32>
    %71 = math.tanh %70 : vector<16x1024xf32>
    %cst_49 = arith.constant 1.000000e+00 : f32
    %72 = vector.broadcast %cst_49 : f32 to vector<16x1024xf32>
    %73 = arith.addf %71, %72 : vector<16x1024xf32>
    %cst_50 = arith.constant 5.000000e-01 : f32
    %74 = vector.broadcast %cst_50 : f32 to vector<16x1024xf32>
    %75 = arith.mulf %74, %73 : vector<16x1024xf32>
    %76 = arith.truncf %75 : vector<16x1024xf32> to vector<16x1024xbf16>
    %c0_51 = arith.constant 0 : index
    %c0_52 = arith.constant 0 : index
    %77 = vector.load %arg7[%c0_51, %c0_52] : memref<16x1024xbf16, #tpu.memory_space<vmem>>, vector<16x1024xbf16>
    tpu.vector_store %arg7[%c0_51, %c0_52], %76 {strides = array<i32>} : memref<16x1024xbf16, #tpu.memory_space<vmem>>, vector<16x1024xbf16>,
    return
  }
  func.func @transform_0(%arg0: i32) -> (i32, i32) {
    %c0_i32 = arith.constant 0 : i32
    %c0_i32_0 = arith.constant 0 : i32
    return %arg0, %c0_i32 : i32, i32
  }
  func.func @transform_1(%arg0: i32) -> (i32, i32) {
    %c0_i32 = arith.constant 0 : i32
    %c0_i32_0 = arith.constant 0 : i32
    %c0_i32_1 = arith.constant 0 : i32
    return %c0_i32, %c0_i32_0 : i32, i32
  }
  func.func @transform_2(%arg0: i32) -> (i32, i32, i32) {
    %c0_i32 = arith.constant 0 : i32
    %c0_i32_0 = arith.constant 0 : i32
    %c0_i32_1 = arith.constant 0 : i32
    %c0_i32_2 = arith.constant 0 : i32
    return %c0_i32, %c0_i32_0, %c0_i32_1 : i32, i32, i32
  }
  func.func @transform_3(%arg0: i32) -> (i32, i32) {
    %c0_i32 = arith.constant 0 : i32
    %c0_i32_0 = arith.constant 0 : i32
    %c0_i32_1 = arith.constant 0 : i32
    return %c0_i32, %c0_i32_0 : i32, i32
  }
  func.func @transform_4(%arg0: i32) -> (i32, i32) {
    %c0_i32 = arith.constant 0 : i32
    %c0_i32_0 = arith.constant 0 : i32
    %c0_i32_1 = arith.constant 0 : i32
    return %c0_i32, %c0_i32_0 : i32, i32
  }
  func.func @transform_5(%arg0: i32) -> (i32, i32) {
    %c0_i32 = arith.constant 0 : i32
    %c0_i32_0 = arith.constant 0 : i32
    %c0_i32_1 = arith.constant 0 : i32
    return %c0_i32, %c0_i32_0 : i32, i32
  }
  func.func @transform_6(%arg0: i32) -> (i32, i32) {
    %c0_i32 = arith.constant 0 : i32
    %c0_i32_0 = arith.constant 0 : i32
    return %arg0, %c0_i32 : i32, i32
  }
  func.func @transform_7(%arg0: i32) -> (i32, i32) {
    %c0_i32 = arith.constant 0 : i32
    %c0_i32_0 = arith.constant 0 : i32
    return %arg0, %c0_i32 : i32, i32
  }
}

</mosaic_0001>

<bundles_post_ra>
// kernel: tpu_custom_call.1
= control target key start
LH: loop header
LB: loop body
LE: loop exit
PB: predicated region body
PF: predicated region fallthrough
CT: control target
= control target key end

     0   :  { %13 = vsyncpa [#allocation3], 0  ;;  %s3330_s0 = inlined_call_operand.hbm [shape: f32[16,1024], index: 0, kind: input, shape index: {}]   ;;  %s3331_s1 = inlined_call_operand.hbm [shape: bf16[1024,128], index: 1, kind: input, shape index: {}]   ;;  %s3332_s2 = inlined_call_operand.hbm [shape: bf16[6,128,128], index: 2, kind: input, shape index: {}]   ;;  %s3333_s3 = inlined_call_operand.hbm [shape: bf16[128,1024], index: 3, kind: input, shape index: {}]   ;;  %s3334_s4 = inlined_call_operand.hbm [shape: f32[7,128], index: 4, kind: input, shape index: {}]   ;;  %s3335_s5 = inlined_call_operand.hbm [shape: f32[1,1024], index: 5, kind: input, shape index: {}]   ;;  %s3336_s6 = inlined_call_operand.hbm [shape: bf16[16,1024], index: 6, kind: output, shape index: {0}]   ;;  %s3337_s7 = inlined_call_operand.hbm [shape: bf16[16,128], index: 7, kind: output, shape index: {1}]  }
   0x1   :  { %14 = vsyncpa [#allocation6], 0 }
   0x2   :  { %15 = vsyncpa [#allocation9], 0 }
   0x3   :  { %16 = vsyncpa [#allocation12], 0 }
   0x4   :  { %17 = vsyncpa [#allocation4], 0 }
   0x5   :  { %18 = vsyncpa [#allocation15], 0  ;;  %s3076_s24 = smov [#allocation5]   ;;  %s2888_s28 = scalar_lea.hbm %s3331_s1, 8192 }
   0x6   :  { %s36_s25 = sshll.u32 %s3076_s24, 4  ;;  %p2889_p0 = scmp.ne.s32.totalorder %s3331_s1, %s2888_s28  ;;  %s37_s25 = int_to_ptr.vmem [resolvable:$true] %s36_s25 }
   0x7   :  { %p2892_p1 = scmp.lt.u32.totalorder %s2888_s28, %s3331_s1 }
   0x9   :  { %p2894_p2 = pnand %p2892_p1, %p2889_p0 }
   0xb   :  { %2897 = shalt.err (!%p2894_p2)
}
   0xc   :  { %s2898_s10 = scalar_lea.vmem %s37_s25, 8192  ;;  %p2903_p4 = scmp.lt.s32.totalorder %s37_s25, %s37_s25 }
   0xd   :  { %p2899_p3 = scmp.ne.s32.totalorder %s37_s25, %s2898_s10  ;;  %p2904_p5 = scmp.lt.s32.totalorder %s2898_s10, %s2898_s10 }
   0xf   :  { %p2905_p6 = por %p2904_p5, %p2903_p4 }
  0x11   :  { %p2906_p7 = pnand %p2905_p6, %p2899_p3 }
  0x13   :  { %2909 = shalt.err (!%p2906_p7)
}
  0x14   :  { %s3077_s11 = smov 64   ;;  %s3078_s12 = smov 4  }
  0x15   :  { %42 = dma.hbm_to_vmem [thread:$0]  %s3331_s1, 8192, %s37_s25, [#allocation6], %s3077_s11, %s3077_s11, %s3078_s12  }
  0x16   :  { %s3079_s15 = smov [#allocation8]   ;;  %s2910_s19 = scalar_lea.hbm %s3333_s3, 8192 }
  0x17   :  { %s60_s16 = sshll.u32 %s3079_s15, 4  ;;  %p2911_p8 = scmp.ne.s32.totalorder %s3333_s3, %s2910_s19  ;;  %s61_s16 = int_to_ptr.vmem [resolvable:$true] %s60_s16 }
  0x18   :  { %p2914_p9 = scmp.lt.u32.totalorder %s2910_s19, %s3333_s3 }
  0x1a   :  { %p2916_p10 = pnand %p2914_p9, %p2911_p8 }
  0x1c   :  { %2919 = shalt.err (!%p2916_p10)
}
  0x1d   :  { %s2920_s24 = scalar_lea.vmem %s61_s16, 8192  ;;  %p2925_p12 = scmp.lt.s32.totalorder %s61_s16, %s61_s16 }
  0x1e   :  { %p2921_p11 = scmp.ne.s32.totalorder %s61_s16, %s2920_s24  ;;  %p2926_p13 = scmp.lt.s32.totalorder %s2920_s24, %s2920_s24 }
  0x20   :  { %p2927_p0 = por %p2926_p13, %p2925_p12 }
  0x22   :  { %p2928_p1 = pnand %p2927_p0, %p2921_p11 }
  0x24   :  { %2931 = shalt.err (!%p2928_p1)
}
  0x25   :  { %s3080_s1 = smov 512   ;;  %s3081_s25 = smov 32  }
  0x26   :  { %66 = dma.hbm_to_vmem [thread:$0]  %s3333_s3, 8192, %s61_s16, [#allocation9], %s3080_s1, %s3080_s1, %s3081_s25  }
  0x27   :  { %s3082_s28 = smov [#allocation2]   ;;  %s3083_s30 = smov [#allocation7]  }
  0x28   :  { %s24_s29 = sshll.u32 %s3082_s28, 4  ;;  %s48_s8 = sshll.u32 %s3083_s30, 4  ;;  %s25_s29 = int_to_ptr.vmem [resolvable:$true] %s24_s29  ;;  %s49_s8 = int_to_ptr.vmem [resolvable:$true] %s48_s8 }
  0x29   :  { %s2932_s13 = scalar_lea.hbm %s3330_s0, 2048 }
  0x2a   :  { %p2933_p2 = scmp.ne.s32.totalorder %s3330_s0, %s2932_s13  ;;  %p2936_p3 = scmp.lt.u32.totalorder %s2932_s13, %s3330_s0 }
  0x2c   :  { %p2938_p4 = pnand %p2936_p3, %p2933_p2 }
  0x2e   :  { %2941 = shalt.err (!%p2938_p4)
}
  0x2f   :  { %s2942_s3 = scalar_lea.vmem %s25_s29, 2048  ;;  %p2947_p6 = scmp.lt.s32.totalorder %s25_s29, %s25_s29 }
  0x30   :  { %p2943_p5 = scmp.ne.s32.totalorder %s25_s29, %s2942_s3  ;;  %p2948_p7 = scmp.lt.s32.totalorder %s2942_s3, %s2942_s3 }
  0x32   :  { %p2949_p8 = por %p2948_p7, %p2947_p6 }
  0x34   :  { %p2950_p9 = pnand %p2949_p8, %p2943_p5 }
  0x36   :  { %2953 = shalt.err (!%p2950_p9)
}
  0x37   :  { %s3084_s16 = smov 1024   ;;  %s2954_s23 = scalar_lea.hbm %s3332_s2, 6144 }
  0x38   :  { %30 = dma.hbm_to_vmem [thread:$0]  %s3330_s0, 2048, %s25_s29, [#allocation3], %s3084_s16, %s3084_s16, %s3077_s11  }
  0x39   :  { %p2955_p10 = scmp.ne.s32.totalorder %s3332_s2, %s2954_s23  ;;  %p2958_p11 = scmp.lt.u32.totalorder %s2954_s23, %s3332_s2 }
  0x3b   :  { %p2960_p12 = pnand %p2958_p11, %p2955_p10 }
  0x3d   :  { %2963 = shalt.err (!%p2960_p12)
}
  0x3e   :  { %s2964_s30 = scalar_lea.vmem %s49_s8, 6144  ;;  %p2969_p0 = scmp.lt.s32.totalorder %s49_s8, %s49_s8 }
  0x3f   :  { %p2965_p13 = scmp.ne.s32.totalorder %s49_s8, %s2964_s30  ;;  %p2970_p1 = scmp.lt.s32.totalorder %s2964_s30, %s2964_s30 }
  0x41   :  { %p2971_p2 = por %p2970_p1, %p2969_p0 }
  0x43   :  { %p2972_p3 = pnand %p2971_p2, %p2965_p13 }
  0x45   :  { %2975 = shalt.err (!%p2972_p3)
}
  0x46   :  { %54 = dma.hbm_to_vmem [thread:$0]  %s3332_s2, 6144, %s49_s8, [#allocation6], %s3077_s11, %s3077_s11, %s3078_s12  }
  0x47   :  { %s3085_s9 = smov [#allocation10]   ;;  %s3086_s13 = smov [#allocation11]  }
  0x48   :  { %s73_s10 = sshll.u32 %s3085_s9, 4  ;;  %s83_s14 = sshll.u32 %s3086_s13, 4  ;;  %s74_s10 = int_to_ptr.vmem [resolvable:$true] %s73_s10  ;;  %s84_s14 = int_to_ptr.vmem [resolvable:$true] %s83_s14 }
  0x49   :  { %s2976_s18 = scalar_lea.hbm %s3334_s4, 128 }
  0x4a   :  { %p2977_p4 = scmp.ne.s32.totalorder %s3334_s4, %s2976_s18  ;;  %p2980_p5 = scmp.lt.u32.totalorder %s2976_s18, %s3334_s4 }
  0x4c   :  { %p2982_p6 = pnand %p2980_p5, %p2977_p4 }
  0x4e   :  { %2985 = shalt.err (!%p2982_p6)
}
  0x4f   :  { %s2986_s2 = scalar_lea.vmem %s74_s10, 128  ;;  %p2991_p8 = scmp.lt.s32.totalorder %s74_s10, %s74_s10 }
  0x50   :  { %p2987_p7 = scmp.ne.s32.totalorder %s74_s10, %s2986_s2  ;;  %p2992_p9 = scmp.lt.s32.totalorder %s2986_s2, %s2986_s2 }
  0x52   :  { %p2993_p10 = por %p2992_p9, %p2991_p8 }
  0x54   :  { %p2994_p11 = pnand %p2993_p10, %p2987_p7 }
  0x56   :  { %2997 = shalt.err (!%p2994_p11)
}
  0x57   :  { %76 = dma.hbm_to_vmem [thread:$0]  %s3334_s4, 128, %s74_s10, [#allocation9]  }
  0x58   :  { %s2998_s24 = scalar_lea.hbm %s3335_s5, 128 }
  0x59   :  { %p2999_p12 = scmp.ne.s32.totalorder %s3335_s5, %s2998_s24  ;;  %p3002_p13 = scmp.lt.u32.totalorder %s2998_s24, %s3335_s5 }
  0x5b   :  { %p3004_p0 = pnand %p3002_p13, %p2999_p12 }
  0x5d   :  { %3007 = shalt.err (!%p3004_p0)
}
  0x5e   :  { %s3008_s0 = scalar_lea.vmem %s84_s14, 128  ;;  %p3013_p2 = scmp.lt.s32.totalorder %s84_s14, %s84_s14 }
  0x5f   :  { %p3009_p1 = scmp.ne.s32.totalorder %s84_s14, %s3008_s0  ;;  %p3014_p3 = scmp.lt.s32.totalorder %s3008_s0, %s3008_s0 }
  0x61   :  { %p3015_p4 = por %p3014_p3, %p3013_p2 }
  0x63   :  { %p3016_p5 = pnand %p3015_p4, %p3009_p1 }
  0x65   :  { %3019 = shalt.err (!%p3016_p5)
}
  0x66   :  { %86 = dma.hbm_to_vmem [thread:$0]  %s3335_s5, 128, %s84_s14, [#allocation12]  }
  0x67   :  { %3064 = dma.done.wait [#allocation3], 2048  }
  0x68   :  { %3065 = vsyncadd [#allocation3], 4294965248 }
  0x69   :  { %3066 = dma.done.wait [#allocation6], 14336  }
  0x6a   :  { %3067 = vsyncadd [#allocation6], 4294952960 }
  0x6b   :  { %3068 = dma.done.wait [#allocation9], 8320  }
  0x6c   :  { %3069 = vsyncadd [#allocation9], 4294958976 }
  0x6d   :  { %3070 = dma.done.wait [#allocation12], 128  }
  0x6e   :  { %3071 = vsyncadd [#allocation12], 4294967168  ;;  %v2744_v0 = vld [vmem:[#allocation5 + $0x40] sm:$0xff]   ;;  %v2748_v4 = vld [vmem:[#allocation5 + $0x48] sm:$0xff]   ;;  %vm3088_vm0 = vmmov 0   ;;  %s3090_s5 = smov [#allocation14]  }
  0x6f   :  { %v2745_v1 = vld [vmem:[#allocation5 + $0xc0] sm:$0xff]   ;;  %2466 = vmatprep.subr.bf16.mxu0 %v2744_v0  ;;  %v2749_v5 = vld [vmem:[#allocation5 + $0xc8] sm:$0xff]   ;;  %v2752_v8 = vld [vmem:[#allocation5 + $0x50] sm:$0xff]   ;;  %s2239_s9 = sshll.u32 %s3090_s5, 4  ;;  %s2240_s9 = int_to_ptr.vmem [resolvable:$true] %s2239_s9 }
  0x70   :  { %v2746_v2 = vld [vmem:[#allocation5] sm:$0xff]   ;;  %2488 = vmatprep.subr.bf16.mxu1 %v2745_v1  ;;  %v2750_v6 = vld [vmem:[#allocation5 + $0x8] sm:$0xff]   ;;  %v2753_v9 = vld [vmem:[#allocation5 + $0xd0] sm:$0xff]   ;;  %s3020_s10 = scalar_lea.vmem %s2240_s9, 128  ;;  %p3025_p7 = scmp.lt.s32.totalorder %s2240_s9, %s2240_s9 }
  0x71   :  { %v2747_v3 = vld [vmem:[#allocation5 + $0x80] sm:$0xff]   ;;  %2467 = vmatpush3.bf16.msra.mxu0 %v2746_v2  ;;  %v2751_v7 = vld [vmem:[#allocation5 + $0x88] sm:$0xff]   ;;  %v2754_v10 = vld [vmem:[#allocation5 + $0x10] sm:$0xff]   ;;  %p3021_p6 = scmp.ne.s32.totalorder %s2240_s9, %s3020_s10  ;;  %p3026_p8 = scmp.lt.s32.totalorder %s3020_s10, %s3020_s10 }
  0x72   :  { %2489 = vmatpush3.bf16.msra.mxu1 %v2747_v3  ;;  %2468 = vmatprep.subr.bf16.mxu0 %v2748_v4  ;;  %v2755_v11 = vld [vmem:[#allocation5 + $0x90] sm:$0xff]   ;;  %v2756_v12 = vld [vmem:[#allocation5 + $0x58] sm:$0xff]   ;;  %v2760_v16 = vld [vmem:[#allocation5 + $0x60] sm:$0xff]  }
  0x73   :  { %2490 = vmatprep.subr.bf16.mxu1 %v2749_v5  ;;  %v2757_v13 = vld [vmem:[#allocation5 + $0xd8] sm:$0xff]   ;;  %v2761_v17 = vld [vmem:[#allocation5 + $0xe0] sm:$0xff]   ;;  %v2764_v20 = vld [vmem:[#allocation5 + $0x68] sm:$0xff]   ;;  %p3027_p9 = por %p3026_p8, %p3025_p7 }
  0x74   :  { %v2758_v14 = vld [vmem:[#allocation5 + $0x18] sm:$0xff]   ;;  %v2762_v18 = vld [vmem:[#allocation5 + $0x20] sm:$0xff]   ;;  %v2765_v21 = vld [vmem:[#allocation5 + $0xe8] sm:$0xff]  }
  0x75   :  { %2469 = vmatpush3.bf16.msra.mxu0 %v2750_v6  ;;  %v2759_v15 = vld [vmem:[#allocation5 + $0x98] sm:$0xff]   ;;  %v2763_v19 = vld [vmem:[#allocation5 + $0xa0] sm:$0xff]   ;;  %v2766_v22 = vld [vmem:[#allocation5 + $0x28] sm:$0xff]   ;;  %p3028_p10 = pnand %p3027_p9, %p3021_p6 }
  0x76   :  { %2491 = vmatpush3.bf16.msra.mxu1 %v2751_v7  ;;  %2470 = vmatprep.subr.bf16.mxu0 %v2752_v8  ;;  %v2767_v23 = vld [vmem:[#allocation5 + $0xa8] sm:$0xff]   ;;  %v2768_v24 = vld [vmem:[#allocation5 + $0x70] sm:$0xff]   ;;  %v2772_v28 = vld [vmem:[#allocation5 + $0x78] sm:$0xff]  }
  0x77   :  { %2492 = vmatprep.subr.bf16.mxu1 %v2753_v9  ;;  %v2769_v25 = vld [vmem:[#allocation5 + $0xf0] sm:$0xff]   ;;  %v2773_v29 = vld [vmem:[#allocation5 + $0xf8] sm:$0xff]   ;;  %v107_v32 = vld [vmem:[#allocation2 + $0x8] sm:$0xff] }
  0x78   :  { %v2770_v26 = vld [vmem:[#allocation5 + $0x30] sm:$0xff]   ;;  %v2774_v30 = vld [vmem:[#allocation5 + $0x38] sm:$0xff]   ;;  %v115_v33 = vld [vmem:[#allocation2 + $0x48] sm:$0xff] }
  0x79   :  { %2471 = vmatpush3.bf16.msra.mxu0 %v2754_v10  ;;  %v2771_v27 = vld [vmem:[#allocation5 + $0xb0] sm:$0xff]   ;;  %v2775_v31 = vld [vmem:[#allocation5 + $0xb8] sm:$0xff]   ;;  %v252_v35 = vpack.c.bf16 %v115_v33, %v107_v32  ;;  %v106_v37 = vld [vmem:[#allocation2] sm:$0xff] }
  0x7a   :  { %2493 = vmatpush3.bf16.msra.mxu1 %v2755_v11  ;;  %2472 = vmatprep.subr.bf16.mxu0 %v2756_v12  ;;  %v109_v34 = vld [vmem:[#allocation2 + $0x18] sm:$0xff]  ;;  %v114_v38 = vld [vmem:[#allocation2 + $0x40] sm:$0xff]  ;;  %v108_v41 = vld [vmem:[#allocation2 + $0x10] sm:$0xff] }
  0x7b   :  { %2494 = vmatprep.subr.bf16.mxu1 %v2757_v13  ;;  %v117_v36 = vld [vmem:[#allocation2 + $0x58] sm:$0xff]  ;;  %v251_v40 = vpack.c.bf16 %v114_v38, %v106_v37  ;;  %v116_v42 = vld [vmem:[#allocation2 + $0x50] sm:$0xff]  ;;  %679 = vmatprep.mubr.bf16.mxu0 %v252_v35  ;;  %v2776_v44 = vld [vmem:[#allocation5 + $0x140] sm:$0xff]  }
  0x7c   :  { %v254_v39 = vpack.c.bf16 %v117_v36, %v109_v34  ;;  %v253_v43 = vpack.c.bf16 %v116_v42, %v108_v41  ;;  %v2777_v45 = vld [vmem:[#allocation5 + $0x1c0] sm:$0xff]   ;;  %v2780_v48 = vld [vmem:[#allocation5 + $0x148] sm:$0xff]   ;;  %v2784_v52 = vld [vmem:[#allocation5 + $0x150] sm:$0xff]  }
  0x7d   :  { %2473 = vmatpush3.bf16.msra.mxu0 %v2758_v14  ;;  %v2778_v46 = vld [vmem:[#allocation5 + $0x100] sm:$0xff]   ;;  %v2781_v49 = vld [vmem:[#allocation5 + $0x1c8] sm:$0xff]   ;;  %v2785_v53 = vld [vmem:[#allocation5 + $0x1d0] sm:$0xff]  }
  0x7e   :  { %2495 = vmatpush3.bf16.msra.mxu1 %v2759_v15  ;;  %2474 = vmatprep.subr.bf16.mxu0 %v2760_v16  ;;  %v2779_v47 = vld [vmem:[#allocation5 + $0x180] sm:$0xff]   ;;  %v2782_v50 = vld [vmem:[#allocation5 + $0x108] sm:$0xff]   ;;  %v2786_v54 = vld [vmem:[#allocation5 + $0x110] sm:$0xff]  }
  0x7f   :  { %2496 = vmatprep.subr.bf16.mxu1 %v2761_v17  ;;  %720 = vmatprep.mubr.bf16.mxu1 %v254_v39  ;;  %v2783_v51 = vld [vmem:[#allocation5 + $0x188] sm:$0xff]   ;;  %v2787_v55 = vld [vmem:[#allocation5 + $0x190] sm:$0xff]   ;;  %v2788_v56 = vld [vmem:[#allocation5 + $0x158] sm:$0xff]  }
  0x80   :  { %v2789_v57 = vld [vmem:[#allocation5 + $0x1d8] sm:$0xff]   ;;  %v2792_v60 = vld [vmem:[#allocation5 + $0x160] sm:$0xff]   ;;  %v2796_v0 = vld [vmem:[#allocation5 + $0x168] sm:$0xff]  }
  0x81   :  { %2475 = vmatpush3.bf16.msra.mxu0 %v2762_v18  ;;  %v2790_v58 = vld [vmem:[#allocation5 + $0x118] sm:$0xff]   ;;  %v2793_v61 = vld [vmem:[#allocation5 + $0x1e0] sm:$0xff]   ;;  %v2797_v1 = vld [vmem:[#allocation5 + $0x1e8] sm:$0xff]  }
  0x82   :  { %2497 = vmatpush3.bf16.msra.mxu1 %v2763_v19  ;;  %2476 = vmatprep.subr.bf16.mxu0 %v2764_v20  ;;  %v2791_v59 = vld [vmem:[#allocation5 + $0x198] sm:$0xff]   ;;  %v2794_v62 = vld [vmem:[#allocation5 + $0x120] sm:$0xff]   ;;  %v2798_v2 = vld [vmem:[#allocation5 + $0x128] sm:$0xff]  }
  0x83   :  { %2498 = vmatprep.subr.bf16.mxu1 %v2765_v21  ;;  %v2795_v63 = vld [vmem:[#allocation5 + $0x1a0] sm:$0xff]   ;;  %v2799_v3 = vld [vmem:[#allocation5 + $0x1a8] sm:$0xff]   ;;  %v2800_v4 = vld [vmem:[#allocation5 + $0x170] sm:$0xff]  }
  0x84   :  { %v2801_v5 = vld [vmem:[#allocation5 + $0x1f0] sm:$0xff]   ;;  %v2804_v8 = vld [vmem:[#allocation5 + $0x178] sm:$0xff]   ;;  %v111_v12 = vld [vmem:[#allocation2 + $0x28] sm:$0xff] }
  0x85   :  { %2477 = vmatpush3.bf16.msra.mxu0 %v2766_v22  ;;  %v2802_v6 = vld [vmem:[#allocation5 + $0x130] sm:$0xff]   ;;  %v2805_v9 = vld [vmem:[#allocation5 + $0x1f8] sm:$0xff]   ;;  %v119_v13 = vld [vmem:[#allocation2 + $0x68] sm:$0xff] }
  0x86   :  { %2499 = vmatpush3.bf16.msra.mxu1 %v2767_v23  ;;  %2478 = vmatprep.subr.bf16.mxu0 %v2768_v24  ;;  %v2803_v7 = vld [vmem:[#allocation5 + $0x1b0] sm:$0xff]   ;;  %v2806_v10 = vld [vmem:[#allocation5 + $0x138] sm:$0xff]   ;;  %v256_v16 = vpack.c.bf16 %v119_v13, %v111_v12  ;;  %v110_v18 = vld [vmem:[#allocation2 + $0x20] sm:$0xff] }
  0x87   :  { %2500 = vmatprep.subr.bf16.mxu1 %v2769_v25  ;;  %v2807_v11 = vld [vmem:[#allocation5 + $0x1b8] sm:$0xff]   ;;  %v118_v19 = vld [vmem:[#allocation2 + $0x60] sm:$0xff]  ;;  %v112_v20 = vld [vmem:[#allocation2 + $0x30] sm:$0xff]  ;;  %v3087_v25 = vmov 0.0  }
  0x88   :  { %v113_v14 = vld [vmem:[#allocation2 + $0x38] sm:$0xff]  ;;  %v255_v21 = vpack.c.bf16 %v118_v19, %v110_v18  ;;  %v120_v22 = vld [vmem:[#allocation2 + $0x70] sm:$0xff]  ;;  %v2808_v24 = vld [vmem:[#allocation7] sm:$0xff]  }
  0x89   :  { %2479 = vmatpush3.bf16.msra.mxu0 %v2770_v26  ;;  %v121_v15 = vld [vmem:[#allocation2 + $0x78] sm:$0xff]  ;;  %v257_v23 = vpack.c.bf16 %v120_v22, %v112_v20  ;;  %v2809_v26 = vld [vmem:[#allocation7 + $0x8] sm:$0xff]   ;;  %v2816_v33 = vld [vmem:[#allocation7 + $0x40] sm:$0xff]  }
  0x8a   :  { %2501 = vmatpush3.bf16.msra.mxu1 %v2771_v27  ;;  %2480 = vmatprep.subr.bf16.mxu0 %v2772_v28  ;;  %v258_v17 = vpack.c.bf16 %v121_v15, %v113_v14  ;;  %v2810_v27 = vld [vmem:[#allocation7 + $0x10] sm:$0xff]   ;;  %v2811_v28 = vld [vmem:[#allocation7 + $0x18] sm:$0xff]   ;;  %v2817_v34 = vld [vmem:[#allocation7 + $0x48] sm:$0xff]  }
  0x8b   :  { %2502 = vmatprep.subr.bf16.mxu1 %v2773_v29  ;;  %v2812_v29 = vld [vmem:[#allocation7 + $0x20] sm:$0xff]   ;;  %v2815_v32 = vld [vmem:[#allocation7 + $0x38] sm:$0xff]   ;;  %v2818_v35 = vld [vmem:[#allocation7 + $0x50] sm:$0xff]  }
  0x8c   :  { %v2819_v36 = vld [vmem:[#allocation7 + $0x58] sm:$0xff]   ;;  %v2820_v37 = vld [vmem:[#allocation7 + $0x60] sm:$0xff]   ;;  %v2821_v38 = vld [vmem:[#allocation7 + $0x68] sm:$0xff]  }
  0x8d   :  { %2481 = vmatpush3.bf16.msra.mxu0 %v2774_v30  ;;  %v2813_v30 = vld [vmem:[#allocation7 + $0x28] sm:$0xff]   ;;  %v2258_v41 = vld [vmem:[#allocation10] ss:$0 sm:$0xff]  ;;  %v2823_v12 = vld [vmem:[#allocation7 + $0x78] sm:$0xff]  }
  0x8e   :  { %2503 = vmatpush3.bf16.msra.mxu1 %v2775_v31  ;;  %2510 = vmatprep.subr.bf16.mxu0 %v2776_v44  ;;  %v2814_v31 = vld [vmem:[#allocation7 + $0x30] sm:$0xff]   ;;  %v2824_v13 = vld [vmem:[#allocation7 + $0x80] sm:$0xff]   ;;  %v2825_v14 = vld [vmem:[#allocation7 + $0x88] sm:$0xff]  }
  0x8f   :  { %2532 = vmatprep.subr.bf16.mxu1 %v2777_v45  ;;  %v2826_v15 = vld [vmem:[#allocation7 + $0x90] sm:$0xff]   ;;  %v2829_v18 = vld [vmem:[#allocation7 + $0xa8] sm:$0xff]   ;;  %v2323_v19 = vld [vmem:[#allocation10 + $0x1] ss:$0 sm:$0xff] }
  0x90   :  { %680 = vmatmul.mubr.bf16.vlgmr.msra.gmra.mrb[0].mxu0 %v251_v40 }
  0x91   :  { %721 = vmatmul.mubr.bf16.vlgmr.msra.gmra.mrb[0].mxu1 %v253_v43  ;;  %2511 = vmatpush3.bf16.msra.mxu0 %v2778_v46 }
  0x92   :  { %2533 = vmatpush3.bf16.msra.mxu1 %v2779_v47  ;;  %2512 = vmatprep.subr.bf16.mxu0 %v2780_v48 }
  0x93   :  { %2534 = vmatprep.subr.bf16.mxu1 %v2781_v49  ;;  %761 = vmatprep.mubr.bf16.mxu0 %v256_v16  ;;  %v2827_v16 = vld [vmem:[#allocation7 + $0x98] sm:$0xff]  }
  0x94   :  { %802 = vmatprep.mubr.bf16.mxu1 %v258_v17  ;;  %v2828_v17 = vld [vmem:[#allocation7 + $0xa0] sm:$0xff]  }
  0x95   :  { %2513 = vmatpush3.bf16.msra.mxu0 %v2782_v50 }
  0x96   :  { %2535 = vmatpush3.bf16.msra.mxu1 %v2783_v51  ;;  %2514 = vmatprep.subr.bf16.mxu0 %v2784_v52 }
  0x97   :  { %2536 = vmatprep.subr.bf16.mxu1 %v2785_v53 }
  0x99   :  { %2515 = vmatpush3.bf16.msra.mxu0 %v2786_v54 }
  0x9a   :  { %2537 = vmatpush3.bf16.msra.mxu1 %v2787_v55  ;;  %2516 = vmatprep.subr.bf16.mxu0 %v2788_v56 }
  0x9b   :  { %2538 = vmatprep.subr.bf16.mxu1 %v2789_v57 }
  0x9d   :  { %2517 = vmatpush3.bf16.msra.mxu0 %v2790_v58 }
  0x9e   :  { %2539 = vmatpush3.bf16.msra.mxu1 %v2791_v59  ;;  %2518 = vmatprep.subr.bf16.mxu0 %v2792_v60 }
  0x9f   :  { %2540 = vmatprep.subr.bf16.mxu1 %v2793_v61 }
  0xa1   :  { %2519 = vmatpush3.bf16.msra.mxu0 %v2794_v62 }
  0xa2   :  { %2541 = vmatpush3.bf16.msra.mxu1 %v2795_v63  ;;  %2520 = vmatprep.subr.bf16.mxu0 %v2796_v0 }
  0xa3   :  { %2542 = vmatprep.subr.bf16.mxu1 %v2797_v1 }
  0xa5   :  { %2521 = vmatpush3.bf16.msra.mxu0 %v2798_v2 }
  0xa6   :  { %2543 = vmatpush3.bf16.msra.mxu1 %v2799_v3  ;;  %2522 = vmatprep.subr.bf16.mxu0 %v2800_v4 }
  0xa7   :  { %2544 = vmatprep.subr.bf16.mxu1 %v2801_v5 }
  0xa9   :  { %2523 = vmatpush3.bf16.msra.mxu0 %v2802_v6 }
  0xaa   :  { %2545 = vmatpush3.bf16.msra.mxu1 %v2803_v7  ;;  %2524 = vmatprep.subr.bf16.mxu0 %v2804_v8 }
  0xab   :  { %2546 = vmatprep.subr.bf16.mxu1 %v2805_v9 }
  0xad   :  { %2525 = vmatpush3.bf16.msra.mxu0 %v2806_v10 }
  0xae   :  { %2547 = vmatpush3.bf16.msra.mxu1 %v2807_v11  ;;  %2608 = vmatprep.subr.bf16.mxu0 %v3087_v25  ;;  %v2822_v11 = vld [vmem:[#allocation7 + $0x70] sm:$0xff]  }
  0xaf   :  { %2628 = vmatprep.subr.bf16.mxu1 %v3087_v25 }
  0xb0   :  { %762 = vmatmul.mubr.bf16.vlgmr.msra.gmra.mrb[4].mxu0 %v255_v21 }
  0xb1   :  { %803 = vmatmul.mubr.bf16.vlgmr.msra.gmra.mrb[4].mxu1 %v257_v23  ;;  %2609 = vmatpush3.bf16.msra.mxu0 %v2808_v24 }
  0xb2   :  { %2610 = vmatprep.subr.bf16.mxu0 %v3087_v25  ;;  %2624 = vmatprep.mubr.msk.bf16.mxu0 %vm3088_vm0, %v3087_v25 }
  0xb3   :  { %2644 = vmatprep.mubr.msk.bf16.mxu1 %vm3088_vm0, %v3087_v25  ;;  %2629 = vmatpush3.bf16.msra.mxu1 %v2816_v33  ;;  %v2833_v33 = vld [vmem:[#allocation7 + $0xc8] sm:$0xff]  }
  0xb4   :  { %2630 = vmatprep.subr.bf16.mxu1 %v3087_v25 }
  0xb5   :  { %2611 = vmatpush3.bf16.msra.mxu0 %v2809_v26 }
  0xb6   :  { %2612 = vmatprep.subr.bf16.mxu0 %v3087_v25 }
  0xb7   :  { %2631 = vmatpush3.bf16.msra.mxu1 %v2817_v34  ;;  %v2834_v34 = vld [vmem:[#allocation7 + $0xd0] sm:$0xff]  }
  0xb8   :  { %2632 = vmatprep.subr.bf16.mxu1 %v3087_v25 }
  0xb9   :  { %2613 = vmatpush3.bf16.msra.mxu0 %v2810_v27 }
  0xba   :  { %2614 = vmatprep.subr.bf16.mxu0 %v3087_v25 }
  0xbb   :  { %2633 = vmatpush3.bf16.msra.mxu1 %v2818_v35  ;;  %v2835_v35 = vld [vmem:[#allocation7 + $0xd8] sm:$0xff]  }
  0xbc   :  { %2634 = vmatprep.subr.bf16.mxu1 %v3087_v25 }
  0xbd   :  { %2615 = vmatpush3.bf16.msra.mxu0 %v2811_v28 }
  0xbe   :  { %2616 = vmatprep.subr.bf16.mxu0 %v3087_v25 }
  0xbf   :  { %2635 = vmatpush3.bf16.msra.mxu1 %v2819_v36  ;;  %v2836_v36 = vld [vmem:[#allocation7 + $0xe0] sm:$0xff]  }
  0xc0   :  { %2636 = vmatprep.subr.bf16.mxu1 %v3087_v25 }
  0xc1   :  { %2617 = vmatpush3.bf16.msra.mxu0 %v2812_v29 }
  0xc2   :  { %2618 = vmatprep.subr.bf16.mxu0 %v3087_v25 }
  0xc3   :  { %2637 = vmatpush3.bf16.msra.mxu1 %v2820_v37  ;;  %v2837_v37 = vld [vmem:[#allocation7 + $0xe8] sm:$0xff]  }
  0xc4   :  { %2638 = vmatprep.subr.bf16.mxu1 %v3087_v25 }
  0xc5   :  { %2619 = vmatpush3.bf16.msra.mxu0 %v2813_v30  ;;  %v2830_v30 = vld [vmem:[#allocation7 + $0xb0] sm:$0xff]  }
  0xc6   :  { %2620 = vmatprep.subr.bf16.mxu0 %v3087_v25 }
  0xc7   :  { %2639 = vmatpush3.bf16.msra.mxu1 %v2821_v38  ;;  %v2332_v38 = vld [vmem:[#allocation10 + $0x2] ss:$0 sm:$0xff] }
  0xc8   :  { %2640 = vmatprep.subr.bf16.mxu1 %v3087_v25 }
  0xc9   :  { %2621 = vmatpush3.bf16.msra.mxu0 %v2814_v31  ;;  %v2831_v31 = vld [vmem:[#allocation7 + $0xb8] sm:$0xff]  }
  0xca   :  { %2622 = vmatprep.subr.bf16.mxu0 %v3087_v25 }
  0xcb   :  { %2641 = vmatpush3.bf16.msra.mxu1 %v2822_v11 }
  0xcc   :  { %2642 = vmatprep.subr.bf16.mxu1 %v3087_v25 }
  0xcd   :  { %2623 = vmatpush3.bf16.msra.mxu0 %v2815_v32  ;;  %v2832_v32 = vld [vmem:[#allocation7 + $0xc0] sm:$0xff]  }
  0xce   :  { %2648 = vmatprep.subr.bf16.mxu0 %v3087_v25 }
  0xcf   :  { %2643 = vmatpush3.bf16.msra.mxu1 %v2823_v12 }
  0xd0   :  { %2668 = vmatprep.subr.bf16.mxu1 %v3087_v25 }
 0x163   :  { %v2482_v39 = vpop.f32.mrb[0].mxu0 }
 0x164   :  { %v2504_v40 = vpop.f32.mrb[0].mxu1  ;;  %v2483_v42 = vpop.f32.mrb[1].mxu0 }
 0x165   :  { %v2484_v43 = vadd.f32 %v2483_v42, %v2482_v39  ;;  %v2505_v44 = vpop.f32.mrb[1].mxu1  ;;  %v2485_v45 = vpop.f32.mrb[2].mxu0 }
 0x166   :  { %v2506_v46 = vadd.f32 %v2505_v44, %v2504_v40  ;;  %v2507_v47 = vpop.f32.mrb[2].mxu1  ;;  %v2486_v48 = vpop.f32.mrb[3].mxu0 }
 0x167   :  { %v682_v49 = vadd.f32 %v2484_v43, %v2258_v41  ;;  %v2487_v50 = vadd.f32 %v2486_v48, %v2485_v45  ;;  %v2508_v51 = vpop.f32.mrb[3].mxu1  ;;  %v2838_v48 = vld [vmem:[#allocation7 + $0xf0] sm:$0xff]  }
 0x168   :  { %v2509_v52 = vadd.f32 %v2508_v51, %v2507_v47  ;;  %v2841_v51 = vld [vmem:[#allocation7 + $0x108] sm:$0xff]  }
 0x169   :  { %v723_v53 = vadd.f32 %v2506_v46, %v682_v49  ;;  %v685_v54 = vadd.f32 %v2487_v50, %v2258_v41  ;;  %v2839_v49 = vld [vmem:[#allocation7 + $0xf8] sm:$0xff]   ;;  %v2840_v50 = vld [vmem:[#allocation7 + $0x100] sm:$0xff]  }
 0x16b   :  { %v726_v55 = vadd.f32 %v2509_v52, %v685_v54  ;;  %v2842_v52 = vld [vmem:[#allocation7 + $0x110] sm:$0xff]   ;;  %v2844_v54 = vld [vmem:[#allocation7 + $0x120] sm:$0xff]  }
 0x183   :  { %v2526_v56 = vpop.f32.mrb[4].mxu0 }
 0x184   :  { %v2548_v57 = vpop.f32.mrb[4].mxu1  ;;  %v2527_v58 = vpop.f32.mrb[5].mxu0 }
 0x185   :  { %v2528_v59 = vadd.f32 %v2527_v58, %v2526_v56  ;;  %v2549_v60 = vpop.f32.mrb[5].mxu1  ;;  %v2529_v61 = vpop.f32.mrb[6].mxu0  ;;  %v2341_v56 = vld [vmem:[#allocation10 + $0x3] ss:$0 sm:$0xff] }
 0x186   :  { %v2550_v62 = vadd.f32 %v2549_v60, %v2548_v57  ;;  %v2551_v63 = vpop.f32.mrb[6].mxu1  ;;  %v2530_v0 = vpop.f32.mrb[7].mxu0 }
 0x187   :  { %v764_v1 = vadd.f32 %v2528_v59, %v723_v53  ;;  %v2531_v2 = vadd.f32 %v2530_v0, %v2529_v61  ;;  %v2552_v3 = vpop.f32.mrb[7].mxu1  ;;  %v2843_v53 = vld [vmem:[#allocation7 + $0x118] sm:$0xff]   ;;  %v2846_v0 = vld [vmem:[#allocation7 + $0x130] sm:$0xff]  }
 0x188   :  { %v2553_v4 = vadd.f32 %v2552_v3, %v2551_v63  ;;  %v2849_v3 = vld [vmem:[#allocation7 + $0x148] sm:$0xff]  }
 0x189   :  { %v805_v5 = vadd.f32 %v2550_v62, %v764_v1  ;;  %v767_v6 = vadd.f32 %v2531_v2, %v726_v55  ;;  %v2845_v55 = vld [vmem:[#allocation7 + $0x128] sm:$0xff]   ;;  %v2847_v1 = vld [vmem:[#allocation7 + $0x138] sm:$0xff]   ;;  %v2848_v2 = vld [vmem:[#allocation7 + $0x140] sm:$0xff]  }
 0x18b   :  { %v808_v7 = vadd.f32 %v2553_v4, %v767_v6  ;;  %v811_v8 = vmax.f32 %v805_v5, 0.0  ;;  %v2850_v4 = vld [vmem:[#allocation7 + $0x150] sm:$0xff]   ;;  %v2851_v5 = vld [vmem:[#allocation7 + $0x158] sm:$0xff]   ;;  %v2852_v6 = vld [vmem:[#allocation7 + $0x160] sm:$0xff]  }
 0x18d   :  { %v812_v9 = vmax.f32 %v808_v7, 0.0  ;;  %v2853_v7 = vld [vmem:[#allocation7 + $0x168] sm:$0xff]  }
 0x18f   :  { %v830_v10 = vpack.c.bf16 %v812_v9, %v811_v8  ;;  %v2352_v8 = vld [vmem:[#allocation10 + $0x4] ss:$0 sm:$0xff] }
 0x191   :  { %2625 = vmatmul.mubr.bf16.vlgmr.msra.gmra.mrb[8].mxu0 %v830_v10 }
 0x192   :  { %2664 = vmatprep.mubr.msk.bf16.mxu0 %vm3088_vm0, %v3087_v25  ;;  %2649 = vmatpush3.bf16.msra.mxu0 %v2824_v13 }
 0x193   :  { %2650 = vmatprep.subr.bf16.mxu0 %v3087_v25 }
 0x196   :  { %2651 = vmatpush3.bf16.msra.mxu0 %v2825_v14 }
 0x197   :  { %2652 = vmatprep.subr.bf16.mxu0 %v3087_v25 }
 0x19a   :  { %2653 = vmatpush3.bf16.msra.mxu0 %v2826_v15 }
 0x19b   :  { %2654 = vmatprep.subr.bf16.mxu0 %v3087_v25 }
 0x19e   :  { %2655 = vmatpush3.bf16.msra.mxu0 %v2827_v16 }
 0x19f   :  { %2656 = vmatprep.subr.bf16.mxu0 %v3087_v25 }
 0x1a2   :  { %2657 = vmatpush3.bf16.msra.mxu0 %v2828_v17 }
 0x1a3   :  { %2658 = vmatprep.subr.bf16.mxu0 %v3087_v25 }
 0x1a6   :  { %2659 = vmatpush3.bf16.msra.mxu0 %v2829_v18  ;;  %v2854_v18 = vld [vmem:[#allocation7 + $0x170] sm:$0xff]  }
 0x1a7   :  { %2660 = vmatprep.subr.bf16.mxu0 %v3087_v25 }
 0x1aa   :  { %2661 = vmatpush3.bf16.msra.mxu0 %v2830_v30 }
 0x1ab   :  { %2662 = vmatprep.subr.bf16.mxu0 %v3087_v25 }
 0x1ae   :  { %2663 = vmatpush3.bf16.msra.mxu0 %v2831_v31 }
 0x1af   :  { %2688 = vmatprep.subr.bf16.mxu0 %v3087_v25 }
 0x264   :  { %v917_v20 = vpop.f32.mrb[8].mxu0 }
 0x265   :  { %v918_v21 = vadd.f32 %v2323_v19, %v917_v20  ;;  %v2626_v22 = vpop.f32.mrb[9].mxu0  ;;  %v1503_v20 = vld [vmem:[#allocation8] sm:$0xff] }
 0x266   :  { %v920_v23 = vpop.f32.mrb[10].mxu0  ;;  %v1504_v22 = vld [vmem:[#allocation8 + $0x8] sm:$0xff] }
 0x267   :  { %v921_v24 = vadd.f32 %v2323_v19, %v920_v23  ;;  %v2627_v26 = vpop.f32.mrb[11].mxu0  ;;  %v924_v27 = vmax.f32 %v918_v21, 0.0  ;;  %v2855_v19 = vld [vmem:[#allocation7 + $0x178] sm:$0xff]   ;;  %v1507_v21 = vld [vmem:[#allocation8 + $0x20] sm:$0xff] }
 0x268   :  { %v2379_v23 = vcombine.low %v1503_v20, %v1507_v21  ;;  %v1508_v26 = vld [vmem:[#allocation8 + $0x28] sm:$0xff] }
 0x269   :  { %v925_v28 = vmax.f32 %v921_v24, 0.0  ;;  %v2380_v24 = vcombine.high %v1503_v20, %v1507_v21  ;;  %v2382_v30 = vcombine.high %v1504_v22, %v1508_v26 }
 0x26b   :  { %v944_v29 = vpack.c.bf16 %v925_v28, %v924_v27  ;;  %v1511_v27 = vld [vmem:[#allocation8 + $0x40] sm:$0xff] }
 0x26c   :  { %v1515_v28 = vld [vmem:[#allocation8 + $0x60] sm:$0xff] }
 0x26d   :  { %2645 = vmatmul.mubr.bf16.vlgmr.msra.gmra.mrb[8].mxu1 %v944_v29  ;;  %v2381_v29 = vcombine.low %v1504_v22, %v1508_v26  ;;  %v2388_v31 = vcombine.high %v1511_v27, %v1515_v28  ;;  %v1559_v22 = vld [vmem:[#allocation8 + $0x1c0] sm:$0xff] }
 0x26e   :  { %2684 = vmatprep.mubr.msk.bf16.mxu1 %vm3088_vm0, %v3087_v25  ;;  %2669 = vmatpush3.bf16.msra.mxu1 %v2832_v32  ;;  %v2387_v32 = vcombine.low %v1511_v27, %v1515_v28  ;;  %v1564_v27 = vld [vmem:[#allocation8 + $0x1e8] sm:$0xff] }
 0x26f   :  { %2670 = vmatprep.subr.bf16.mxu1 %v3087_v25 }
 0x272   :  { %2671 = vmatpush3.bf16.msra.mxu1 %v2833_v33  ;;  %v1519_v33 = vld [vmem:[#allocation8 + $0x80] sm:$0xff] }
 0x273   :  { %2672 = vmatprep.subr.bf16.mxu1 %v3087_v25 }
 0x276   :  { %2673 = vmatpush3.bf16.msra.mxu1 %v2834_v34 }
 0x277   :  { %2674 = vmatprep.subr.bf16.mxu1 %v3087_v25 }
 0x27a   :  { %2675 = vmatpush3.bf16.msra.mxu1 %v2835_v35 }
 0x27b   :  { %2676 = vmatprep.subr.bf16.mxu1 %v3087_v25 }
 0x27e   :  { %2677 = vmatpush3.bf16.msra.mxu1 %v2836_v36  ;;  %v1527_v36 = vld [vmem:[#allocation8 + $0xc0] sm:$0xff] }
 0x27f   :  { %2678 = vmatprep.subr.bf16.mxu1 %v3087_v25 }
 0x282   :  { %2679 = vmatpush3.bf16.msra.mxu1 %v2837_v37  ;;  %v1531_v37 = vld [vmem:[#allocation8 + $0xe0] sm:$0xff] }
 0x283   :  { %2680 = vmatprep.subr.bf16.mxu1 %v3087_v25 }
 0x286   :  { %2681 = vmatpush3.bf16.msra.mxu1 %v2838_v48  ;;  %v2361_v48 = vld [vmem:[#allocation10 + $0x5] ss:$0 sm:$0xff] }
 0x287   :  { %2682 = vmatprep.subr.bf16.mxu1 %v3087_v25 }
 0x28a   :  { %2683 = vmatpush3.bf16.msra.mxu1 %v2839_v49 }
 0x28b   :  { %2708 = vmatprep.subr.bf16.mxu1 %v3087_v25 }
 0x340   :  { %v1031_v39 = vpop.f32.mrb[8].mxu1 }
 0x341   :  { %v1032_v40 = vadd.f32 %v2332_v38, %v1031_v39  ;;  %v2646_v41 = vpop.f32.mrb[9].mxu1  ;;  %v2403_v39 = vcombine.low %v1527_v36, %v1531_v37 }
 0x342   :  { %v1034_v42 = vpop.f32.mrb[10].mxu1  ;;  %v1539_v41 = vld [vmem:[#allocation8 + $0x120] sm:$0xff] }
 0x343   :  { %v1035_v43 = vadd.f32 %v2332_v38, %v1034_v42  ;;  %v2647_v44 = vpop.f32.mrb[11].mxu1  ;;  %v1038_v45 = vmax.f32 %v1032_v40, 0.0  ;;  %v2404_v38 = vcombine.high %v1527_v36, %v1531_v37  ;;  %v1535_v40 = vld [vmem:[#allocation8 + $0x100] sm:$0xff]  ;;  %v3089_v36 = vmov 0  }
 0x344   :  { %v2412_v42 = vcombine.high %v1535_v40, %v1539_v41  ;;  %v1543_v44 = vld [vmem:[#allocation8 + $0x140] sm:$0xff] }
 0x345   :  { %v1039_v46 = vmax.f32 %v1035_v43, 0.0  ;;  %v2411_v43 = vcombine.low %v1535_v40, %v1539_v41 }
 0x347   :  { %v1058_v47 = vpack.c.bf16 %v1039_v46, %v1038_v45  ;;  %v1547_v45 = vld [vmem:[#allocation8 + $0x160] sm:$0xff] }
 0x348   :  { %v2420_v46 = vcombine.high %v1543_v44, %v1547_v45 }
 0x349   :  { %2665 = vmatmul.mubr.bf16.vlgmr.msra.gmra.mrb[12].mxu0 %v1058_v47  ;;  %v2419_v47 = vcombine.low %v1543_v44, %v1547_v45 }
 0x34a   :  { %2704 = vmatprep.mubr.msk.bf16.mxu0 %vm3088_vm0, %v3087_v25  ;;  %2689 = vmatpush3.bf16.msra.mxu0 %v2840_v50 }
 0x34b   :  { %2690 = vmatprep.subr.bf16.mxu0 %v3087_v25 }
 0x34e   :  { %2691 = vmatpush3.bf16.msra.mxu0 %v2841_v51 }
 0x34f   :  { %2692 = vmatprep.subr.bf16.mxu0 %v3087_v25 }
 0x352   :  { %2693 = vmatpush3.bf16.msra.mxu0 %v2842_v52 }
 0x353   :  { %2694 = vmatprep.subr.bf16.mxu0 %v3087_v25 }
 0x356   :  { %2695 = vmatpush3.bf16.msra.mxu0 %v2843_v53 }
 0x357   :  { %2696 = vmatprep.subr.bf16.mxu0 %v3087_v25 }
 0x35a   :  { %2697 = vmatpush3.bf16.msra.mxu0 %v2844_v54 }
 0x35b   :  { %2698 = vmatprep.subr.bf16.mxu0 %v3087_v25 }
 0x35e   :  { %2699 = vmatpush3.bf16.msra.mxu0 %v2845_v55  ;;  %v1512_v55 = vld [vmem:[#allocation8 + $0x48] sm:$0xff] }
 0x35f   :  { %2700 = vmatprep.subr.bf16.mxu0 %v3087_v25 }
 0x362   :  { %2701 = vmatpush3.bf16.msra.mxu0 %v2846_v0 }
 0x363   :  { %2702 = vmatprep.subr.bf16.mxu0 %v3087_v25 }
 0x366   :  { %2703 = vmatpush3.bf16.msra.mxu0 %v2847_v1  ;;  %v1528_v1 = vld [vmem:[#allocation8 + $0xc8] sm:$0xff] }
 0x367   :  { %1930 = vmatprep.subr.bf16.mxu0 %v2380_v24  ;;  %v1560_v24 = vld [vmem:[#allocation8 + $0x1c8] sm:$0xff] }
 0x41c   :  { %v1145_v57 = vpop.f32.mrb[12].mxu0 }
 0x41d   :  { %v2666_v58 = vpop.f32.mrb[13].mxu0  ;;  %v1146_v60 = vadd.f32 %v2341_v56, %v1145_v57 }
 0x41e   :  { %v1148_v59 = vpop.f32.mrb[14].mxu0 }
 0x41f   :  { %v1149_v61 = vadd.f32 %v2341_v56, %v1148_v59  ;;  %v2667_v62 = vpop.f32.mrb[15].mxu0  ;;  %v1516_v56 = vld [vmem:[#allocation8 + $0x68] sm:$0xff] }
 0x420   :  { %v1524_v62 = vld [vmem:[#allocation8 + $0xa8] sm:$0xff] }
 0x421   :  { %v1152_v63 = vpack.c.bf16 %v1149_v61, %v1146_v60  ;;  %v2390_v60 = vcombine.high %v1512_v55, %v1516_v56  ;;  %v1520_v61 = vld [vmem:[#allocation8 + $0x88] sm:$0xff] }
 0x422   :  { %v2398_v0 = vcombine.high %v1520_v61, %v1524_v62 }
 0x423   :  { %2465 = vst [vmem:[#allocation14] sm:$0xff] %v1152_v63   ;;  %2685 = vmatmul.mubr.bf16.vlgmr.msra.gmra.mrb[12].mxu1 %v1152_v63  ;;  %v2389_v63 = vcombine.low %v1512_v55, %v1516_v56  ;;  %v1521_v55 = vld [vmem:[#allocation8 + $0x90] sm:$0xff] }
 0x424   :  { %2724 = vmatprep.mubr.msk.bf16.mxu1 %vm3088_vm0, %v3087_v25  ;;  %2709 = vmatpush3.bf16.msra.mxu1 %v2848_v2  ;;  %v1532_v2 = vld [vmem:[#allocation8 + $0xe8] sm:$0xff]  ;;  %v1525_v56 = vld [vmem:[#allocation8 + $0xb0] sm:$0xff] }
 0x425   :  { %2710 = vmatprep.subr.bf16.mxu1 %v3087_v25 }
 0x428   :  { %2711 = vmatpush3.bf16.msra.mxu1 %v2849_v3  ;;  %v2397_v3 = vcombine.low %v1520_v61, %v1524_v62  ;;  %v2400_v61 = vcombine.high %v1521_v55, %v1525_v56 }
 0x429   :  { %2712 = vmatprep.subr.bf16.mxu1 %v3087_v25 }
 0x42c   :  { %2713 = vmatpush3.bf16.msra.mxu1 %v2850_v4  ;;  %v2406_v4 = vcombine.high %v1528_v1, %v1532_v2 }
 0x42d   :  { %2714 = vmatprep.subr.bf16.mxu1 %v3087_v25 }
 0x430   :  { %2715 = vmatpush3.bf16.msra.mxu1 %v2851_v5  ;;  %v1536_v5 = vld [vmem:[#allocation8 + $0x108] sm:$0xff] }
 0x431   :  { %2716 = vmatprep.subr.bf16.mxu1 %v3087_v25 }
 0x434   :  { %2717 = vmatpush3.bf16.msra.mxu1 %v2852_v6  ;;  %v1540_v6 = vld [vmem:[#allocation8 + $0x128] sm:$0xff] }
 0x435   :  { %2718 = vmatprep.subr.bf16.mxu1 %v3087_v25 }
 0x438   :  { %2719 = vmatpush3.bf16.msra.mxu1 %v2853_v7  ;;  %v2405_v7 = vcombine.low %v1528_v1, %v1532_v2  ;;  %v1530_v1 = vld [vmem:[#allocation8 + $0xd8] sm:$0xff] }
 0x439   :  { %2720 = vmatprep.subr.bf16.mxu1 %v3087_v25  ;;  %v1534_v2 = vld [vmem:[#allocation8 + $0xf8] sm:$0xff] }
 0x43c   :  { %2721 = vmatpush3.bf16.msra.mxu1 %v2854_v18  ;;  %v1556_v18 = vld [vmem:[#allocation8 + $0x1a8] sm:$0xff] }
 0x43d   :  { %2722 = vmatprep.subr.bf16.mxu1 %v3087_v25  ;;  %v1523_v25 = vld [vmem:[#allocation8 + $0xa0] sm:$0xff] }
 0x43e   :  { %v2396_v34 = vcombine.high %v1519_v33, %v1523_v25  ;;  %v2395_v35 = vcombine.low %v1519_v33, %v1523_v25  ;;  %v1506_v33 = vld [vmem:[#allocation8 + $0x18] sm:$0xff] }
 0x440   :  { %2723 = vmatpush3.bf16.msra.mxu1 %v2855_v19 }
 0x441   :  { %1973 = vmatprep.subr.bf16.mxu1 %v2382_v30  ;;  %v2438_v30 = vcombine.high %v1560_v24, %v1564_v27 }
 0x4f6   :  { %v1266_v9 = vpop.f32.mrb[12].mxu1 }
 0x4f7   :  { %v1267_v10 = vadd.f32 %v2352_v8, %v1266_v9  ;;  %v2686_v11 = vpop.f32.mrb[13].mxu1  ;;  %v1544_v9 = vld [vmem:[#allocation8 + $0x148] sm:$0xff] }
 0x4f8   :  { %v1269_v12 = vpop.f32.mrb[14].mxu1  ;;  %v2413_v11 = vcombine.low %v1536_v5, %v1540_v6 }
 0x4f9   :  { %v1270_v13 = vadd.f32 %v2352_v8, %v1269_v12  ;;  %v2687_v14 = vpop.f32.mrb[15].mxu1  ;;  %v1273_v15 = vmax.f32 %v1267_v10, 0.0  ;;  %v2414_v8 = vcombine.high %v1536_v5, %v1540_v6  ;;  %v1548_v10 = vld [vmem:[#allocation8 + $0x168] sm:$0xff]  ;;  %v2410_v6 = vcombine.high %v1530_v1, %v1534_v2 }
 0x4fa   :  { %v2422_v12 = vcombine.high %v1544_v9, %v1548_v10  ;;  %v1551_v14 = vld [vmem:[#allocation8 + $0x180] sm:$0xff] }
 0x4fb   :  { %v1274_v16 = vmax.f32 %v1270_v13, 0.0  ;;  %v2421_v13 = vcombine.low %v1544_v9, %v1548_v10  ;;  %v1538_v9 = vld [vmem:[#allocation8 + $0x118] sm:$0xff] }
 0x4fc   :  { %v1542_v10 = vld [vmem:[#allocation8 + $0x138] sm:$0xff] }
 0x4fd   :  { %v1293_v17 = vpack.c.bf16 %v1274_v16, %v1273_v15  ;;  %v1555_v15 = vld [vmem:[#allocation8 + $0x1a0] sm:$0xff]  ;;  %v1552_v16 = vld [vmem:[#allocation8 + $0x188] sm:$0xff] }
 0x4fe   :  { %v2427_v19 = vcombine.low %v1551_v14, %v1555_v15  ;;  %v2429_v20 = vcombine.low %v1552_v16, %v1556_v18  ;;  %v2430_v21 = vcombine.high %v1552_v16, %v1556_v18  ;;  %v1549_v16 = vld [vmem:[#allocation8 + $0x170] sm:$0xff]  ;;  %v1550_v18 = vld [vmem:[#allocation8 + $0x178] sm:$0xff] }
 0x4ff   :  { %2705 = vmatmul.mubr.bf16.vlgmr.msra.gmra.mrb[16].mxu0 %v1293_v17  ;;  %v2428_v17 = vcombine.high %v1551_v14, %v1555_v15  ;;  %v2418_v14 = vcombine.high %v1538_v9, %v1542_v10  ;;  %v1545_v15 = vld [vmem:[#allocation8 + $0x150] sm:$0xff] }
 0x500   :  { %1931 = vmatpush1.bf16.msra.mxu0 %v2379_v23  ;;  %v1563_v23 = vld [vmem:[#allocation8 + $0x1e0] sm:$0xff]  ;;  %1962 = vmatprep.mubr.bf16.mxu0 %v3089_v36 }
 0x501   :  { %1932 = vmatprep.subr.bf16.mxu0 %v2388_v31  ;;  %v2436_v26 = vcombine.high %v1559_v22, %v1563_v23  ;;  %v2435_v28 = vcombine.low %v1559_v22, %v1563_v23  ;;  %v1505_v31 = vld [vmem:[#allocation8 + $0x10] sm:$0xff] }
 0x502   :  { %v1553_v23 = vld [vmem:[#allocation8 + $0x190] sm:$0xff] }
 0x504   :  { %1933 = vmatpush1.bf16.msra.mxu0 %v2387_v32  ;;  %v1509_v32 = vld [vmem:[#allocation8 + $0x30] sm:$0xff] }
 0x505   :  { %1934 = vmatprep.subr.bf16.mxu0 %v2396_v34  ;;  %v2383_v25 = vcombine.low %v1505_v31, %v1509_v32  ;;  %v2384_v34 = vcombine.high %v1505_v31, %v1509_v32  ;;  %v1561_v32 = vld [vmem:[#allocation8 + $0x1d0] sm:$0xff] }
 0x508   :  { %1935 = vmatpush1.bf16.msra.mxu0 %v2395_v35  ;;  %v1510_v35 = vld [vmem:[#allocation8 + $0x38] sm:$0xff] }
 0x509   :  { %1936 = vmatprep.subr.bf16.mxu0 %v2404_v38  ;;  %v2385_v37 = vcombine.low %v1506_v33, %v1510_v35  ;;  %v2386_v38 = vcombine.high %v1506_v33, %v1510_v35  ;;  %v1565_v33 = vld [vmem:[#allocation8 + $0x1f0] sm:$0xff] }
 0x50c   :  { %1937 = vmatpush1.bf16.msra.mxu0 %v2403_v39  ;;  %v2370_v39 = vld [vmem:[#allocation10 + $0x6] ss:$0 sm:$0xff] }
 0x50d   :  { %1938 = vmatprep.subr.bf16.mxu0 %v2412_v42 }
 0x510   :  { %1939 = vmatpush1.bf16.msra.mxu0 %v2411_v43 }
 0x511   :  { %1940 = vmatprep.subr.bf16.mxu0 %v2420_v46  ;;  %v1513_v46 = vld [vmem:[#allocation8 + $0x50] sm:$0xff] }
 0x514   :  { %1941 = vmatpush1.bf16.msra.mxu0 %v2419_v47  ;;  %v1517_v47 = vld [vmem:[#allocation8 + $0x70] sm:$0xff] }
 0x515   :  { %1942 = vmatprep.subr.bf16.mxu0 %v2428_v17  ;;  %v1546_v17 = vld [vmem:[#allocation8 + $0x158] sm:$0xff] }
 0x516   :  { %v2426_v22 = vcombine.high %v1546_v17, %v1550_v18 }
 0x518   :  { %1943 = vmatpush1.bf16.msra.mxu0 %v2427_v19 }
 0x519   :  { %1944 = vmatprep.subr.bf16.mxu0 %v2436_v26  ;;  %v1554_v26 = vld [vmem:[#allocation8 + $0x198] sm:$0xff] }
 0x51c   :  { %1945 = vmatpush1.bf16.msra.mxu0 %v2435_v28  ;;  %v2423_v28 = vcombine.low %v1545_v15, %v1549_v16 }
 0x51d   :  { %2016 = vmatprep.subr.bf16.mxu0 %v2384_v34  ;;  %v1566_v34 = vld [vmem:[#allocation8 + $0x1f8] sm:$0xff] }
 0x5d2   :  { %v1380_v49 = vpop.f32.mrb[16].mxu0 }
 0x5d3   :  { %v1381_v50 = vadd.f32 %v2361_v48, %v1380_v49  ;;  %v2706_v51 = vpop.f32.mrb[17].mxu0  ;;  %v1518_v49 = vld [vmem:[#allocation8 + $0x78] sm:$0xff] }
 0x5d4   :  { %v1383_v52 = vpop.f32.mrb[18].mxu0 }
 0x5d5   :  { %v1384_v53 = vadd.f32 %v2361_v48, %v1383_v52  ;;  %v2707_v54 = vpop.f32.mrb[19].mxu0  ;;  %v1387_v57 = vmax.f32 %v1381_v50, 0.0  ;;  %v1514_v48 = vld [vmem:[#allocation8 + $0x58] sm:$0xff] }
 0x5d6   :  { %v2394_v54 = vcombine.high %v1514_v48, %v1518_v49 }
 0x5d7   :  { %v1388_v58 = vmax.f32 %v1384_v53, 0.0  ;;  %v2392_v53 = vcombine.high %v1513_v46, %v1517_v47 }
 0x5d9   :  { %v1407_v59 = vpack.c.bf16 %v1388_v58, %v1387_v57  ;;  %v1522_v57 = vld [vmem:[#allocation8 + $0x98] sm:$0xff] }
 0x5da   :  { %v1526_v58 = vld [vmem:[#allocation8 + $0xb8] sm:$0xff] }
 0x5db   :  { %2725 = vmatmul.mubr.bf16.vlgmr.msra.gmra.mrb[16].mxu1 %v1407_v59  ;;  %v2391_v59 = vcombine.low %v1513_v46, %v1517_v47  ;;  %v2402_v62 = vcombine.high %v1522_v57, %v1526_v58 }
 0x5dc   :  { %1974 = vmatpush1.bf16.msra.mxu1 %v2381_v29  ;;  %v2437_v29 = vcombine.low %v1560_v24, %v1564_v27  ;;  %2005 = vmatprep.mubr.bf16.mxu1 %v3089_v36  ;;  %v1557_v24 = vld [vmem:[#allocation8 + $0x1b0] sm:$0xff]  ;;  %v1558_v27 = vld [vmem:[#allocation8 + $0x1b8] sm:$0xff] }
 0x5dd   :  { %1975 = vmatprep.subr.bf16.mxu1 %v2390_v60  ;;  %v2393_v60 = vcombine.low %v1514_v48, %v1518_v49  ;;  %v2434_v31 = vcombine.high %v1554_v26, %v1558_v27  ;;  %v2431_v35 = vcombine.low %v1553_v23, %v1557_v24 }
 0x5e0   :  { %1976 = vmatpush1.bf16.msra.mxu1 %v2389_v63  ;;  %v1529_v63 = vld [vmem:[#allocation8 + $0xd0] sm:$0xff] }
 0x5e1   :  { %1977 = vmatprep.subr.bf16.mxu1 %v2398_v0  ;;  %v1533_v0 = vld [vmem:[#allocation8 + $0xf0] sm:$0xff] }
 0x5e2   :  { %v2408_v5 = vcombine.high %v1529_v63, %v1533_v0 }
 0x5e4   :  { %1978 = vmatpush1.bf16.msra.mxu1 %v2397_v3  ;;  %v2399_v3 = vcombine.low %v1521_v55, %v1525_v56 }
 0x5e5   :  { %1979 = vmatprep.subr.bf16.mxu1 %v2406_v4  ;;  %v2401_v4 = vcombine.low %v1522_v57, %v1526_v58 }
 0x5e8   :  { %1980 = vmatpush1.bf16.msra.mxu1 %v2405_v7  ;;  %v1537_v7 = vld [vmem:[#allocation8 + $0x110] sm:$0xff] }
 0x5e9   :  { %1981 = vmatprep.subr.bf16.mxu1 %v2414_v8  ;;  %v1541_v8 = vld [vmem:[#allocation8 + $0x130] sm:$0xff] }
 0x5ea   :  { %v2415_v19 = vcombine.low %v1537_v7, %v1541_v8 }
 0x5ec   :  { %1982 = vmatpush1.bf16.msra.mxu1 %v2413_v11  ;;  %v2407_v11 = vcombine.low %v1529_v63, %v1533_v0 }
 0x5ed   :  { %1983 = vmatprep.subr.bf16.mxu1 %v2422_v12  ;;  %v2409_v12 = vcombine.low %v1530_v1, %v1534_v2 }
 0x5f0   :  { %1984 = vmatpush1.bf16.msra.mxu1 %v2421_v13  ;;  %v2416_v13 = vcombine.high %v1537_v7, %v1541_v8 }
 0x5f1   :  { %1985 = vmatprep.subr.bf16.mxu1 %v2430_v21  ;;  %v2424_v21 = vcombine.high %v1545_v15, %v1549_v16 }
 0x5f4   :  { %1986 = vmatpush1.bf16.msra.mxu1 %v2429_v20  ;;  %v2417_v20 = vcombine.low %v1538_v9, %v1542_v10 }
 0x5f5   :  { %1987 = vmatprep.subr.bf16.mxu1 %v2438_v30  ;;  %v2432_v30 = vcombine.high %v1553_v23, %v1557_v24 }
 0x5f8   :  { %1988 = vmatpush1.bf16.msra.mxu1 %v2437_v29  ;;  %v2425_v29 = vcombine.low %v1546_v17, %v1550_v18 }
 0x5f9   :  { %2059 = vmatprep.subr.bf16.mxu1 %v2386_v38 }
 0x6ae   :  { %v1494_v40 = vpop.f32.mrb[16].mxu1 }
 0x6af   :  { %v1495_v41 = vadd.f32 %v2370_v39, %v1494_v40  ;;  %v2726_v42 = vpop.f32.mrb[17].mxu1 }
 0x6b0   :  { %v1497_v43 = vpop.f32.mrb[18].mxu1 }
 0x6b1   :  { %v1498_v44 = vadd.f32 %v2370_v39, %v1497_v43  ;;  %v2727_v45 = vpop.f32.mrb[19].mxu1  ;;  %v1501_v50 = vmax.f32 %v1495_v41, 0.0  ;;  %v2439_v39 = vcombine.low %v1561_v32, %v1565_v33 }
 0x6b3   :  { %v1502_v51 = vmax.f32 %v1498_v44, 0.0 }
 0x6b5   :  { %v3274_v52 = vpack.c.bf16 %v1502_v51, %v1501_v50 }
 0x6b7   :  { %1963 = vmatmul.mubr.bf16.vlgmr.msra.gmra.mrb[20].mxu0 %v3274_v52  ;;  %2006 = vmatmul.mubr.bf16.vlgmr.msra.gmra.mrb[20].mxu1 %v3274_v52 }
 0x6b8   :  { %2017 = vmatpush1.bf16.msra.mxu0 %v2383_v25  ;;  %2060 = vmatpush1.bf16.msra.mxu1 %v2385_v37  ;;  %v1562_v25 = vld [vmem:[#allocation8 + $0x1d8] sm:$0xff]  ;;  %v2440_v37 = vcombine.high %v1561_v32, %v1565_v33 }
 0x6b9   :  { %2018 = vmatprep.subr.bf16.mxu0 %v2392_v53  ;;  %2061 = vmatprep.subr.bf16.mxu1 %v2394_v54  ;;  %v2442_v38 = vcombine.high %v1562_v25, %v1566_v34  ;;  %v2441_v40 = vcombine.low %v1562_v25, %v1566_v34 }
 0x6ba   :  { %2048 = vmatprep.mubr.bf16.mxu0 %v3089_v36  ;;  %2091 = vmatprep.mubr.bf16.mxu1 %v3089_v36  ;;  %v2433_v36 = vcombine.low %v1554_v26, %v1558_v27 }
 0x6bc   :  { %2019 = vmatpush1.bf16.msra.mxu0 %v2391_v59  ;;  %2062 = vmatpush1.bf16.msra.mxu1 %v2393_v60 }
 0x6bd   :  { %2020 = vmatprep.subr.bf16.mxu0 %v2400_v61  ;;  %2063 = vmatprep.subr.bf16.mxu1 %v2402_v62 }
 0x6c0   :  { %2021 = vmatpush1.bf16.msra.mxu0 %v2399_v3  ;;  %2064 = vmatpush1.bf16.msra.mxu1 %v2401_v4 }
 0x6c1   :  { %2022 = vmatprep.subr.bf16.mxu0 %v2408_v5  ;;  %2065 = vmatprep.subr.bf16.mxu1 %v2410_v6 }
 0x6c4   :  { %2023 = vmatpush1.bf16.msra.mxu0 %v2407_v11  ;;  %2066 = vmatpush1.bf16.msra.mxu1 %v2409_v12 }
 0x6c5   :  { %2024 = vmatprep.subr.bf16.mxu0 %v2416_v13  ;;  %2067 = vmatprep.subr.bf16.mxu1 %v2418_v14 }
 0x6c8   :  { %2025 = vmatpush1.bf16.msra.mxu0 %v2415_v19  ;;  %2068 = vmatpush1.bf16.msra.mxu1 %v2417_v20 }
 0x6c9   :  { %2026 = vmatprep.subr.bf16.mxu0 %v2424_v21  ;;  %2069 = vmatprep.subr.bf16.mxu1 %v2426_v22 }
 0x6cc   :  { %2027 = vmatpush1.bf16.msra.mxu0 %v2423_v28  ;;  %2070 = vmatpush1.bf16.msra.mxu1 %v2425_v29 }
 0x6cd   :  { %2028 = vmatprep.subr.bf16.mxu0 %v2432_v30  ;;  %2071 = vmatprep.subr.bf16.mxu1 %v2434_v31 }
 0x6d0   :  { %2029 = vmatpush1.bf16.msra.mxu0 %v2431_v35  ;;  %2072 = vmatpush1.bf16.msra.mxu1 %v2433_v36 }
 0x6d1   :  { %2030 = vmatprep.subr.bf16.mxu0 %v2440_v37  ;;  %2073 = vmatprep.subr.bf16.mxu1 %v2442_v38 }
 0x6d4   :  { %2031 = vmatpush1.bf16.msra.mxu0 %v2439_v39  ;;  %2074 = vmatpush1.bf16.msra.mxu1 %v2441_v40 }
 0x6d7   :  { %2049 = vmatmul.mubr.bf16.vlgmr.msra.gmra.mrb[24].mxu0 %v3274_v52  ;;  %2092 = vmatmul.mubr.bf16.vlgmr.msra.gmra.mrb[24].mxu1 %v3274_v52 }
 0x6d8   :  { %3031 = shalt.err (!%p3028_p10)
}
 0x6d9   :  { %s3032_s15 = scalar_lea.hbm %s3337_s7, 128 }
 0x6da   :  { %p3033_p11 = scmp.ne.s32.totalorder %s3337_s7, %s3032_s15  ;;  %p3036_p12 = scmp.lt.u32.totalorder %s3032_s15, %s3337_s7 }
 0x6dc   :  { %p3038_p13 = pnand %p3036_p12, %p3033_p11 }
 0x6de   :  { %3041 = shalt.err (!%p3038_p13)
}
 0x6df   :  { %2245 = dma.vmem_to_hbm [thread:$0]  %s2240_s9, 128, %s3337_s7, [#allocation15], %s3077_s11, %s3077_s11, %s3078_s12   ;;  %v1570_v41 = vlaneseq  ;;  %v3299_v45 = vld [vmem:[#allocation11] sm:$0xff] }
 0x6e0   :  { %s3091_s7 = smov [#allocation13]  }
 0x6e1   :  { %v3295_v42 = vshrl.u32 %v1570_v41, 7  ;;  %s2227_s11 = sshll.u32 %s3091_s7, 4  ;;  %s2228_s11 = int_to_ptr.vmem [resolvable:$true] %s2227_s11 }
 0x6e2   :  { %s3042_s12 = scalar_lea.vmem %s2228_s11, 1024  ;;  %p3047_p1 = scmp.lt.s32.totalorder %s2228_s11, %s2228_s11 }
 0x6e3   :  { %v1572_v43 = vsub.s32 0, %v3295_v42  ;;  %v1580_v44 = vsub.s32 2, %v3295_v42  ;;  %v1576_v46 = vsub.s32 1, %v3295_v42  ;;  %v1584_v47 = vsub.s32 3, %v3295_v42  ;;  %p3043_p0 = scmp.ne.s32.totalorder %s2228_s11, %s3042_s12  ;;  %p3048_p2 = scmp.lt.s32.totalorder %s3042_s12, %s3042_s12 }
 0x6e4   :  { %v1588_v38 = vsub.s32 4, %v3295_v42  ;;  %v1596_v39 = vsub.s32 6, %v3295_v42  ;;  %v1592_v41 = vsub.s32 5, %v3295_v42 }
 0x6e5   :  { %v1573_v48 = vrot.slane %v3299_v45, %v1572_v43  ;;  %v1581_v49 = vrot.slane %v3299_v45, %v1580_v44  ;;  %v1577_v50 = vrot.slane %v3299_v45, %v1576_v46  ;;  %v1585_v51 = vrot.slane %v3299_v45, %v1584_v47  ;;  %p3049_p3 = por %p3048_p2, %p3047_p1 }
 0x6e6   :  { %v1600_v43 = vsub.s32 7, %v3295_v42  ;;  %v1589_v46 = vrot.slane %v3299_v45, %v1588_v38  ;;  %v1597_v47 = vrot.slane %v3299_v45, %v1596_v39 }
 0x6e7   :  { %p3050_p4 = pnand %p3049_p3, %p3043_p0 }
 0x78a   :  { %v1964_v52 = vpop.f32.mrb[20].mxu0  ;;  %v2007_v53 = vpop.f32.mrb[20].mxu1 }
 0x78b   :  { %v1965_v54 = vadd.f32 %v1964_v52, %v1573_v48  ;;  %v2008_v55 = vadd.f32 %v2007_v53, %v1581_v49  ;;  %v1966_v56 = vpop.f32.mrb[21].mxu0  ;;  %v2009_v57 = vpop.f32.mrb[21].mxu1 }
 0x78c   :  { %v1967_v58 = vadd.f32 %v1966_v56, %v1577_v50  ;;  %v2010_v59 = vadd.f32 %v2009_v57, %v1585_v51  ;;  %v1968_v60 = vpop.f32.mrb[22].mxu0  ;;  %v2011_v61 = vpop.f32.mrb[22].mxu1 }
 0x78d   :  { %v2102_v62 = vmul.f32 0.5, %v1965_v54  ;;  %v2104_v63 = vmul.f32 0.5, %v2008_v55  ;;  %v1969_v0 = vadd.f32 %v1968_v60, %v1573_v48  ;;  %v2012_v1 = vadd.f32 %v2011_v61, %v1581_v49  ;;  %v1970_v2 = vpop.f32.mrb[23].mxu0  ;;  %v2013_v3 = vpop.f32.mrb[23].mxu1 }
 0x78e   :  { %v2103_v4 = vmul.f32 0.5, %v1967_v58  ;;  %v2105_v5 = vmul.f32 0.5, %v2010_v59  ;;  %v1971_v6 = vadd.f32 %v1970_v2, %v1577_v50  ;;  %v2014_v7 = vadd.f32 %v2013_v3, %v1585_v51 }
 0x78f   :  { %2856 = vtanh.f32 %v2102_v62  ;;  %v2110_v8 = vmul.f32 0.5, %v1969_v0  ;;  %v2112_v9 = vmul.f32 0.5, %v2012_v1  ;;  %v1593_v48 = vrot.slane %v3299_v45, %v1592_v41 }
 0x790   :  { %2858 = vtanh.f32 %v2104_v63  ;;  %v2111_v10 = vmul.f32 0.5, %v1971_v6  ;;  %v2113_v11 = vmul.f32 0.5, %v2014_v7  ;;  %v1601_v49 = vrot.slane %v3299_v45, %v1600_v43 }
 0x791   :  { %2860 = vtanh.f32 %v2103_v4 }
 0x792   :  { %2862 = vtanh.f32 %v2105_v5 }
 0x793   :  { %2864 = vtanh.f32 %v2110_v8 }
 0x794   :  { %2866 = vtanh.f32 %v2112_v9 }
 0x795   :  { %2868 = vtanh.f32 %v2111_v10 }
 0x796   :  { %2870 = vtanh.f32 %v2113_v11 }
 0x799   :  { %v2857_v12 = vpop.eup %2856 }
 0x79a   :  { %v2859_v13 = vpop.eup %2858  ;;  %v2134_v14 = vadd.f32 1.0, %v2857_v12 }
 0x79b   :  { %v2861_v15 = vpop.eup %2860  ;;  %v2136_v16 = vadd.f32 1.0, %v2859_v13 }
 0x79c   :  { %v2863_v17 = vpop.eup %2862  ;;  %v2150_v18 = vmul.f32 0.5, %v2134_v14  ;;  %v2135_v19 = vadd.f32 1.0, %v2861_v15 }
 0x79d   :  { %v2865_v20 = vpop.eup %2864  ;;  %v2152_v21 = vmul.f32 0.5, %v2136_v16  ;;  %v2137_v22 = vadd.f32 1.0, %v2863_v17 }
 0x79e   :  { %v2867_v23 = vpop.eup %2866  ;;  %v2151_v24 = vmul.f32 0.5, %v2135_v19  ;;  %v2142_v26 = vadd.f32 1.0, %v2865_v20 }
 0x79f   :  { %v2869_v27 = vpop.eup %2868  ;;  %v2153_v28 = vmul.f32 0.5, %v2137_v22  ;;  %v2144_v29 = vadd.f32 1.0, %v2867_v23 }
 0x7a0   :  { %v2871_v30 = vpop.eup %2870  ;;  %v2453_v31 = vpack.c.bf16 %v2151_v24, %v2150_v18  ;;  %v2158_v32 = vmul.f32 0.5, %v2142_v26  ;;  %v2143_v33 = vadd.f32 1.0, %v2869_v27 }
 0x7a1   :  { %v2454_v25 = vpack.c.bf16 %v2153_v28, %v2152_v21  ;;  %v2160_v34 = vmul.f32 0.5, %v2144_v29  ;;  %v2145_v35 = vadd.f32 1.0, %v2871_v30 }
 0x7a2   :  { %2214 = vst [vmem:[#allocation13] sm:$0xff] %v2453_v31  ;;  %v2159_v36 = vmul.f32 0.5, %v2143_v33 }
 0x7a3   :  { %2215 = vst [vmem:[#allocation13 + $0x8] sm:$0xff] %v2454_v25  ;;  %v2161_v37 = vmul.f32 0.5, %v2145_v35 }
 0x7a4   :  { %v2457_v40 = vpack.c.bf16 %v2159_v36, %v2158_v32 }
 0x7a5   :  { %v2458_v44 = vpack.c.bf16 %v2161_v37, %v2160_v34 }
 0x7a6   :  { %2218 = vst [vmem:[#allocation13 + $0x20] sm:$0xff] %v2457_v40 }
 0x7a7   :  { %2219 = vst [vmem:[#allocation13 + $0x28] sm:$0xff] %v2458_v44 }
 0x7aa   :  { %v2050_v50 = vpop.f32.mrb[24].mxu0  ;;  %v2093_v51 = vpop.f32.mrb[24].mxu1 }
 0x7ab   :  { %v2051_v52 = vadd.f32 %v2050_v50, %v1589_v46  ;;  %v2094_v53 = vadd.f32 %v2093_v51, %v1597_v47  ;;  %v2052_v54 = vpop.f32.mrb[25].mxu0  ;;  %v2095_v55 = vpop.f32.mrb[25].mxu1 }
 0x7ac   :  { %v2053_v56 = vadd.f32 %v2052_v54, %v1593_v48  ;;  %v2096_v57 = vadd.f32 %v2095_v55, %v1601_v49  ;;  %v2054_v42 = vpop.f32.mrb[26].mxu0  ;;  %v2097_v58 = vpop.f32.mrb[26].mxu1 }
 0x7ad   :  { %v2106_v59 = vmul.f32 0.5, %v2051_v52  ;;  %v2108_v60 = vmul.f32 0.5, %v2094_v53  ;;  %v2055_v61 = vadd.f32 %v2054_v42, %v1589_v46  ;;  %v2098_v62 = vadd.f32 %v2097_v58, %v1597_v47  ;;  %v2056_v63 = vpop.f32.mrb[27].mxu0  ;;  %v2099_v0 = vpop.f32.mrb[27].mxu1 }
 0x7ae   :  { %v2107_v1 = vmul.f32 0.5, %v2053_v56  ;;  %v2109_v2 = vmul.f32 0.5, %v2096_v57  ;;  %v2057_v3 = vadd.f32 %v2056_v63, %v1593_v48  ;;  %v2100_v45 = vadd.f32 %v2099_v0, %v1601_v49 }
 0x7af   :  { %2872 = vtanh.f32 %v2106_v59  ;;  %v2114_v4 = vmul.f32 0.5, %v2055_v61  ;;  %v2116_v5 = vmul.f32 0.5, %v2098_v62 }
 0x7b0   :  { %2874 = vtanh.f32 %v2108_v60  ;;  %v2115_v6 = vmul.f32 0.5, %v2057_v3  ;;  %v2117_v7 = vmul.f32 0.5, %v2100_v45 }
 0x7b1   :  { %2876 = vtanh.f32 %v2107_v1 }
 0x7b2   :  { %2878 = vtanh.f32 %v2109_v2 }
 0x7b3   :  { %2880 = vtanh.f32 %v2114_v4 }
 0x7b4   :  { %2882 = vtanh.f32 %v2116_v5 }
 0x7b5   :  { %2884 = vtanh.f32 %v2115_v6 }
 0x7b6   :  { %2886 = vtanh.f32 %v2117_v7 }
 0x7b9   :  { %v2873_v8 = vpop.eup %2872 }
 0x7ba   :  { %v2875_v9 = vpop.eup %2874  ;;  %v2138_v10 = vadd.f32 1.0, %v2873_v8 }
 0x7bb   :  { %v2877_v11 = vpop.eup %2876  ;;  %v2140_v12 = vadd.f32 1.0, %v2875_v9 }
 0x7bc   :  { %v2879_v13 = vpop.eup %2878  ;;  %v2154_v14 = vmul.f32 0.5, %v2138_v10  ;;  %v2139_v15 = vadd.f32 1.0, %v2877_v11 }
 0x7bd   :  { %v2881_v16 = vpop.eup %2880  ;;  %v2156_v17 = vmul.f32 0.5, %v2140_v12  ;;  %v2141_v18 = vadd.f32 1.0, %v2879_v13 }
 0x7be   :  { %v2883_v19 = vpop.eup %2882  ;;  %v2155_v20 = vmul.f32 0.5, %v2139_v15  ;;  %v2146_v21 = vadd.f32 1.0, %v2881_v16 }
 0x7bf   :  { %v2885_v22 = vpop.eup %2884  ;;  %v2157_v23 = vmul.f32 0.5, %v2141_v18  ;;  %v2148_v24 = vadd.f32 1.0, %v2883_v19 }
 0x7c0   :  { %v2887_v26 = vpop.eup %2886  ;;  %v2455_v27 = vpack.c.bf16 %v2155_v20, %v2154_v14  ;;  %v2162_v28 = vmul.f32 0.5, %v2146_v21  ;;  %v2147_v29 = vadd.f32 1.0, %v2885_v22 }
 0x7c1   :  { %v2456_v30 = vpack.c.bf16 %v2157_v23, %v2156_v17  ;;  %v2164_v31 = vmul.f32 0.5, %v2148_v24  ;;  %v2149_v32 = vadd.f32 1.0, %v2887_v26 }
 0x7c2   :  { %2216 = vst [vmem:[#allocation13 + $0x10] sm:$0xff] %v2455_v27  ;;  %v2163_v33 = vmul.f32 0.5, %v2147_v29 }
 0x7c3   :  { %2217 = vst [vmem:[#allocation13 + $0x18] sm:$0xff] %v2456_v30  ;;  %v2165_v25 = vmul.f32 0.5, %v2149_v32 }
 0x7c4   :  { %v2459_v34 = vpack.c.bf16 %v2163_v33, %v2162_v28 }
 0x7c5   :  { %v2460_v35 = vpack.c.bf16 %v2165_v25, %v2164_v31 }
 0x7c6   :  { %2220 = vst [vmem:[#allocation13 + $0x30] sm:$0xff] %v2459_v34 }
 0x7c7   :  { %2221 = vst [vmem:[#allocation13 + $0x38] sm:$0xff] %v2460_v35 }
 0x7c8   :  { %3053 = shalt.err (!%p3050_p4)
}
 0x7c9   :  { %s3054_s21 = scalar_lea.hbm %s3336_s6, 1024 }
 0x7ca   :  { %p3055_p5 = scmp.ne.s32.totalorder %s3336_s6, %s3054_s21  ;;  %p3058_p6 = scmp.lt.u32.totalorder %s3054_s21, %s3336_s6 }
 0x7cc   :  { %p3060_p7 = pnand %p3058_p6, %p3055_p5 }
 0x7ce   :  { %3063 = shalt.err (!%p3060_p7)
}
 0x7cf   :  { %2233 = dma.vmem_to_hbm [thread:$0]  %s2228_s11, 1024, %s3336_s6, [#allocation4], %s3080_s1, %s3080_s1, %s3081_s25  }
 0x7d0   :  { %3072 = dma.done.wait [#allocation4], 1024  }
 0x7d1   :  { %3073 = vsyncadd [#allocation4], 4294966272 }
 0x7d2   :  { %3074 = dma.done.wait [#allocation15], 128  }
 0x7d3   :  { %3075 = vsyncadd [#allocation15], 4294967168 }
 0x7d4   :  { %2252 = vsyncpa [#allocation3], 1 }
 0x7d5   :  { %2253 = vsyncpa [#allocation6], 1 }
 0x7d6   :  { %2254 = vsyncpa [#allocation9], 1 }
 0x7d7   :  { %2255 = vsyncpa [#allocation12], 1 }
 0x7d8   :  { %2256 = vsyncpa [#allocation4], 1 }
 0x7d9   :  { %2257 = vsyncpa [#allocation15], 1 }

</bundles_post_ra>
